<compile_context>
chip_gen: v6e
topology: v6e:2x2x1
jax: 0.10.0
libtpu: 0.0.40
codegen_flags: <defaults>
</compile_context>

<pallas_src>
import functools

import jax
import jax.numpy as jnp
from jax.experimental import pallas as pl
from jax.experimental.pallas import tpu as pltpu


# ----------------------------- fused Pallas kernel -----------------------------

def _stgcn_fused_kernel(xp_ref, wgT_ref, aT_ref, bias1_ref, s1_ref,
                        wmat_ref, s2_ref, shift2_ref, out_ref,
                        *, K, kt, pad, t_tile, t_valid, cdt):
    # xp_ref    : (1, T_in_pad, Vp, Cip) cdt  whole (zero padded) sample, VMEM resident
    # wgT_ref   : (Cip, K*Cop) cdt            1x1 conv weight, lanes ordered (k, c)
    # aT_ref    : (K, Vp, Vp) cdt             aT[k, w, v] = A[k, v, w]
    # bias1_ref : (Vp, Cop) f32               gcn bias pushed through A, + BN1 shift
    # s1_ref    : (1, Cop)  f32               BN1 scale
    # wmat_ref  : (kt*Cop, Cop) cdt           temporal conv weight, rows (dt, ci)
    # s2_ref / shift2_ref : (1, Cop) f32      BN2 scale / (conv bias + BN2 shift)
    # out_ref   : (1, t_tile, Vp, Cop) f32    channels-last output tile
    Th = t_tile + 2 * pad                     # frames incl. temporal halo
    Vp, Cop = bias1_ref.shape
    Cip = xp_ref.shape[3]
    f32 = jnp.float32

    j = pl.program_id(1)
    t0 = pl.multiple_of(j * t_tile, 8)        # window start (padded time coords)

    # ---- stage 1: 1x1 conv over channels.  rows = (t, v), lanes = (k, c) ----
    x_win = xp_ref[0, pl.ds(t0, Th), :, :]                       # (Th, Vp, Cip) cdt
    z = jnp.dot(x_win.reshape(Th * Vp, Cip), wgT_ref[...],
                preferred_element_type=f32)                      # (Th*Vp, K*Cop) f32
    z3 = z.reshape(Th, Vp, K * Cop)

    # ---- stage 2: graph aggregation with CHANNEL lanes (no post-transpose):
    #      y[t, w, c] = sum_k sum_v A[k, v, w] * z[t, v, (k, c)]
    #      per-k lane slice (vreg-aligned when Cop % 128 == 0) + t-batched matmul.
    y = None
    for k in range(K):                                           # K in {2, 3}: static unroll
        zk = z3[:, :, k * Cop:(k + 1) * Cop].astype(cdt)         # (Th, Vp, Cop)
        ak = jnp.broadcast_to(aT_ref[k][None], (Th, Vp, Vp))     # (Th, w, v) cdt
        yk = jax.lax.dot_general(ak, zk, (((2,), (1,)), ((0,), (0,))),
                                 preferred_element_type=f32)     # (Th, Vp, Cop)
        y = yk if y is None else y + yk

    # ---- BN1 (folded, incl. gcn bias) + ReLU + temporal zero-pad masking ----
    act = y * s1_ref[...].reshape(1, 1, Cop) + bias1_ref[...].reshape(1, Vp, Cop)
    act = jnp.maximum(act, 0.0)
    g = t0 + jax.lax.broadcasted_iota(jnp.int32, (Th, 1, 1), 0)  # global padded t
    act = jnp.where((g >= pad) & (g < pad + t_valid), act, 0.0)

    # ---- stage 3: temporal (kt,1) conv as kt accumulation matmuls (no im2col) ----
    o = None
    for dt in range(kt):                                         # static unroll
        a_dt = act[dt:dt + t_tile].reshape(t_tile * Vp, Cop).astype(cdt)
        term = jnp.dot(a_dt, wmat_ref[dt * Cop:(dt + 1) * Cop, :],
                       preferred_element_type=f32)               # (t_tile*Vp, Cop)
        o = term if o is None else o + term

    # ---- BN2 (folded, incl. conv bias) + identity residual + final ReLU ----
    o = o * s2_ref[...] + shift2_ref[...]
    o = o + x_win[pad:pad + t_tile].reshape(t_tile * Vp, Cip).astype(f32)   # Cip == Cop
    out_ref[...] = jnp.maximum(o, 0.0).reshape(1, t_tile, Vp, Cop).astype(out_ref.dtype)


# ----------------------------------- wrapper -----------------------------------

def _ceil_to(x, m):
    return ((x + m - 1) // m) * m


def _hw_budget():
    """(target (t, v)-rows per grid step, VMEM budget cap) from the detected chip."""
    try:
        vmem = int(pltpu.get_tpu_info().vmem_capacity_bytes)
    except Exception:                      # detection unavailable -> safe middle ground
        return 1024, 64 * 2 ** 20
    if vmem <= 80 * 2 ** 20:               # v7x-class TensorCore (64 MiB VMEM)
        return 512, 48 * 2 ** 20
    return 2048, 96 * 2 ** 20              # v5e / v6e (128 MiB VMEM)


def graph_conv_block_forward(x, A, params, *, matmul_dtype=jnp.float32,
                             target_rows=None, vmem_cap_bytes=None):
    """Fused ST-GCN Graph_Conv_Block forward (eval).  x: (N,Cin,T,V), A: (K,V,V)."""
    (wg, bg, g1, be1, m1, v1, wt, bt, g2, be2, m2, v2) = params
    N, Cin, T, V = (int(d) for d in x.shape)
    K = int(A.shape[0])
    Cout = int(wg.shape[0]) // K
    kt = int(wt.shape[2])
    pad = (kt - 1) // 2
    eps = 1e-5
    cdt = matmul_dtype
    # TODO(synk): only the identity residual (in_channels == out_channels, stride 1)
    # and eval-mode BatchNorm / Dropout(p=0) paths of the module are implemented.
    assert Cin == Cout, "non-identity residual branch not implemented"

    if target_rows is None or vmem_cap_bytes is None:
        auto_rows, auto_cap = _hw_budget()
        target_rows = target_rows or auto_rows
        vmem_cap_bytes = vmem_cap_bytes or auto_cap

    Cip, Cop, Vp = _ceil_to(Cin, 8), _ceil_to(Cout, 8), _ceil_to(V, 8)
    f32 = jnp.float32

    # ---- fold eval-mode BatchNorms and both conv biases into scales / shifts ----
    s1 = g1 / jnp.sqrt(v1 + eps)
    sh1 = be1 - m1 * s1
    s2 = g2 / jnp.sqrt(v2 + eps)
    sh2 = be2 - m2 * s2
    # gcn bias pushed through the aggregation: beff[w, c] = sum_k bg[k, c] * sum_v A[k, v, w]
    beff = jnp.einsum('kw,kc->wc', A.astype(f32).sum(axis=1), bg.reshape(K, Cout))
    bias1 = beff * s1[None, :] + sh1[None, :]                    # (V, Cout)
    shift2 = bt * s2 + sh2                                       # (Cout,)

    # ---- pack / zero-pad the small operands (channels & nodes -> multiples of 8) ----
    wg_p = jnp.zeros((K, Cop, Cip), f32).at[:, :Cout, :Cin].set(
        wg.reshape(K, Cout, Cin).astype(f32))
    wgT = wg_p.reshape(K * Cop, Cip).T.astype(cdt)               # (Cip, K*Cop), lanes (k, c)
    a_p = jnp.zeros((K, Vp, Vp), f32).at[:, :V, :V].set(A.astype(f32))
    aT = jnp.transpose(a_p, (0, 2, 1)).astype(cdt)               # aT[k, w, v] = A[k, v, w]
    bias1_p = jnp.zeros((Vp, Cop), f32).at[:V, :Cout].set(bias1)
    s1_p = jnp.zeros((1, Cop), f32).at[0, :Cout].set(s1)
    wt_p = jnp.zeros((kt, Cop, Cop), f32).at[:, :Cin, :Cout].set(
        jnp.transpose(wt.astype(f32), (2, 1, 0)))                # (dt, ci, co)
    wmat = wt_p.reshape(kt * Cop, Cop).astype(cdt)
    s2_p = jnp.zeros((1, Cop), f32).at[0, :Cout].set(s2)
    shift2_p = jnp.zeros((1, Cop), f32).at[0, :Cout].set(shift2)

    # ---- time tiling: ~target_rows rows of (t, v) per grid step, halo = pad frames ----
    t_tile = min(_ceil_to(T, 8), _ceil_to(max(1, target_rows // Vp), 8))
    n_tj = int(pl.cdiv(T, t_tile))
    T_out_pad = n_tj * t_tile
    T_in_pad = T_out_pad + 2 * pad
    Th = t_tile + 2 * pad

    # single layout change of the input: NCHW -> (N, T, V, C), zero padded, in cdt
    x_tvc = jnp.transpose(x, (0, 2, 3, 1)).astype(cdt)
    xp = jnp.zeros((N, T_in_pad, Vp, Cip), cdt).at[:, pad:pad + T, :V, :Cin].set(x_tvc)

    itm = jnp.dtype(cdt).itemsize
    est = (2 * T_in_pad * Vp * Cip * itm                 # double-buffered input block
           + 2 * t_tile * Vp * Cop * 4                   # double-buffered output block
           + (Cip * K * Cop + K * Vp * Vp + kt * Cop * Cop + (3 + Vp) * Cop) * itm
           + 6 * Th * Vp * K * Cop * 4)                  # in-kernel f32 temporaries (rough)
    vmem_limit = int(min(vmem_cap_bytes, max(32 * 2 ** 20, est)))

    kernel = functools.partial(_stgcn_fused_kernel, K=K, kt=kt, pad=pad,
                               t_tile=t_tile, t_valid=T, cdt=cdt)
    out_p = pl.pallas_call(
        kernel,
        out_shape=jax.ShapeDtypeStruct((N, T_out_pad, Vp, Cop), f32),
        grid=(N, n_tj),
        in_specs=[
            pl.BlockSpec((1, T_in_pad, Vp, Cip), lambda n, j: (n, 0, 0, 0)),
            pl.BlockSpec((Cip, K * Cop), lambda n, j: (0, 0)),
            pl.BlockSpec((K, Vp, Vp), lambda n, j: (0, 0, 0)),
            pl.BlockSpec((Vp, Cop), lambda n, j: (0, 0)),
            pl.BlockSpec((1, Cop), lambda n, j: (0, 0)),
            pl.BlockSpec((kt * Cop, Cop), lambda n, j: (0, 0)),
            pl.BlockSpec((1, Cop), lambda n, j: (0, 0)),
            pl.BlockSpec((1, Cop), lambda n, j: (0, 0)),
        ],
        out_specs=pl.BlockSpec((1, t_tile, Vp, Cop), lambda n, j: (n, j, 0, 0)),
        compiler_params=pltpu.CompilerParams(
            dimension_semantics=("parallel", "arbitrary"),
            vmem_limit_bytes=vmem_limit),
    )(xp, wgT, aT, bias1_p, s1_p, wmat, s2_p, shift2_p)

    out = jnp.transpose(out_p[:, :T, :V, :Cout], (0, 3, 1, 2))   # back to NCHW
    return out, A


# ---------------- pure-JAX reference (for correctness check) ----------------

def reference_forward(x, A, params):
    (wg, bg, g1, be1, m1, v1, wt, bt, g2, be2, m2, v2) = params
    N, Cin, T, V = x.shape
    K = A.shape[0]
    Cout = wg.shape[0] // K
    kt = wt.shape[2]
    pad = (kt - 1) // 2
    eps = 1e-5
    z = jnp.einsum('oc,nctv->notv', wg, x) + bg[None, :, None, None]
    z = z.reshape(N, K, Cout, T, V)
    y = jnp.einsum('nkctv,kvw->nctw', z, A)
    s1 = g1 / jnp.sqrt(v1 + eps); sh1 = be1 - m1 * s1
    a = jnp.maximum(y * s1[None, :, None, None] + sh1[None, :, None, None], 0.0)
    ap = jnp.pad(a, ((0, 0), (0, 0), (pad, pad), (0, 0)))
    conv = sum(jnp.einsum('oc,nctv->notv', wt[:, :, dt], ap[:, :, dt:dt + T, :])
               for dt in range(kt))
    conv = conv + bt[None, :, None, None]
    s2 = g2 / jnp.sqrt(v2 + eps); sh2 = be2 - m2 * s2
    y2 = conv * s2[None, :, None, None] + sh2[None, :, None, None]
    return jnp.maximum(y2 + x, 0.0), A


if __name__ == "__main__":
    N, Cin, T, V = 2, 4, 16, 16
    Cout, K, kt = 4, 2, 3        # kernel_size = (3, 2): temporal 3, spatial K = 2

    key = jax.random.PRNGKey(0)
    ks = jax.random.split(key, 12)
    x = jax.random.normal(ks[0], (N, Cin, T, V), jnp.float32)
    A = jax.random.normal(ks[1], (K, V, V), jnp.float32) * 0.2

    # Deterministic synthetic parameters (shapes from the module's __init__).
    wg = jax.random.normal(ks[2], (K * Cout, Cin), jnp.float32) * 0.3
    bg = jax.random.normal(ks[3], (K * Cout,), jnp.float32) * 0.1
    g1 = 1.0 + 0.1 * jax.random.normal(ks[4], (Cout,), jnp.float32)
    be1 = 0.1 * jax.random.normal(ks[5], (Cout,), jnp.float32)
    m1 = 0.1 * jax.random.normal(ks[6], (Cout,), jnp.float32)
    v1 = 1.0 + 0.1 * jnp.abs(jax.random.normal(ks[7], (Cout,), jnp.float32))
    wt = jax.random.normal(ks[8], (Cout, Cout, kt), jnp.float32) * 0.3
    bt = jax.random.normal(ks[9], (Cout,), jnp.float32) * 0.1
    g2 = 1.0 + 0.1 * jax.random.normal(ks[10], (Cout,), jnp.float32)
    be2 = 0.1 * jax.random.normal(ks[11], (Cout,), jnp.float32)
    m2 = jnp.zeros((Cout,), jnp.float32)
    v2 = jnp.ones((Cout,), jnp.float32)
    params = (wg, bg, g1, be1, m1, v1, wt, bt, g2, be2, m2, v2)

    fwd_f32 = jax.jit(lambda xx, aa: graph_conv_block_forward(
        xx, aa, params, matmul_dtype=jnp.float32)[0])
    fwd_bf16 = jax.jit(lambda xx, aa: graph_conv_block_forward(
        xx, aa, params, matmul_dtype=jnp.bfloat16)[0])

    ref, _ = reference_forward(x, A, params)

    out = jax.block_until_ready(fwd_f32(x, A))
    assert out.shape == (N, Cout, T, V)
    err = float(jnp.max(jnp.abs(out - ref)))
    assert err < 1e-3, f"f32 max abs err {err}"

    out_bf = jax.block_until_ready(fwd_bf16(x, A))
    err_bf = float(jnp.max(jnp.abs(out_bf - ref)))
    assert err_bf < 1e-1, f"bf16 max abs err {err_bf}"

    print("KERNEL_OK")
</pallas_src>

<mosaic_0001>
module attributes {stable_mosaic.version = 11 : i64} {
  func.func @_stgcn_fused_kernel(%arg0: i32, %arg1: i32, %arg2: memref<1x18x16x8xf32, #tpu.memory_space<vmem>>, %arg3: memref<8x16xf32, #tpu.memory_space<vmem>>, %arg4: memref<2x16x16xf32, #tpu.memory_space<vmem>>, %arg5: memref<16x8xf32, #tpu.memory_space<vmem>>, %arg6: memref<1x8xf32, #tpu.memory_space<vmem>>, %arg7: memref<24x8xf32, #tpu.memory_space<vmem>>, %arg8: memref<1x8xf32, #tpu.memory_space<vmem>>, %arg9: memref<1x8xf32, #tpu.memory_space<vmem>>, %arg10: memref<1x16x16x8xf32, #tpu.memory_space<vmem>>) attributes {dimension_semantics = [#tpu.dimension_semantics<parallel>, #tpu.dimension_semantics<arbitrary>], iteration_bounds = array<i64: 2, 1>, scalar_prefetch = 0 : i64, scratch_operands = 0 : i64, tpu.core_type = #tpu.core_type<tc>, window_params = [{transform_indices = @transform_0, window_bounds = array<i64: 1, 18, 16, 8>}, {pipeline_mode = #tpu.pipeline_mode<synchronous>, transform_indices = @transform_1, window_bounds = array<i64: 8, 16>}, {pipeline_mode = #tpu.pipeline_mode<synchronous>, transform_indices = @transform_2, window_bounds = array<i64: 2, 16, 16>}, {pipeline_mode = #tpu.pipeline_mode<synchronous>, transform_indices = @transform_3, window_bounds = array<i64: 16, 8>}, {pipeline_mode = #tpu.pipeline_mode<synchronous>, transform_indices = @transform_4, window_bounds = array<i64: 1, 8>}, {pipeline_mode = #tpu.pipeline_mode<synchronous>, transform_indices = @transform_5, window_bounds = array<i64: 24, 8>}, {pipeline_mode = #tpu.pipeline_mode<synchronous>, transform_indices = @transform_6, window_bounds = array<i64: 1, 8>}, {pipeline_mode = #tpu.pipeline_mode<synchronous>, transform_indices = @transform_7, window_bounds = array<i64: 1, 8>}, {transform_indices = @transform_8, window_bounds = array<i64: 1, 16, 16, 8>}]} {
    %c16_i32 = arith.constant 16 : i32
    %0 = arith.muli %arg1, %c16_i32 : i32
    %1 = tpu.assume_multiple %0, 8 : i32
    %c0 = arith.constant 0 : index
    %2 = arith.index_cast %1 : i32 to index
    %c0_0 = arith.constant 0 : index
    %c0_1 = arith.constant 0 : index
    %3 = vector.load %arg2[%c0, %2, %c0_0, %c0_1] : memref<1x18x16x8xf32, #tpu.memory_space<vmem>>, vector<1x18x16x8xf32>
    %4 = vector.shape_cast %3 : vector<1x18x16x8xf32> to vector<18x16x8xf32>
    %5 = vector.shape_cast %4 : vector<18x16x8xf32> to vector<288x8xf32>
    %c0_2 = arith.constant 0 : index
    %c0_3 = arith.constant 0 : index
    %6 = vector.load %arg3[%c0_2, %c0_3] : memref<8x16xf32, #tpu.memory_space<vmem>>, vector<8x16xf32>
    %cst = arith.constant dense<0.000000e+00> : vector<288x16xf32>
    %7 = tpu.matmul %5, %6, %cst {dimension_numbers = #tpu.dot_dimension_numbers<[1], [0], [0], [1], [0, 0, 1, 1], [], []>} : vector<288x8xf32>, vector<8x16xf32>, vector<288x16xf32> -> vector<288x16xf32>
    %8 = vector.shape_cast %7 : vector<288x16xf32> to vector<18x16x16xf32>
    %9 = vector.extract_strided_slice %8 {offsets = [0, 0, 0], sizes = [18, 16, 8], strides = [1, 1, 1]} : vector<18x16x16xf32> to vector<18x16x8xf32>
    %c0_4 = arith.constant 0 : index
    %c0_5 = arith.constant 0 : index
    %c0_6 = arith.constant 0 : index
    %10 = vector.load %arg4[%c0_4, %c0_5, %c0_6] : memref<2x16x16xf32, #tpu.memory_space<vmem>>, vector<1x16x16xf32>
    %11 = vector.shape_cast %10 : vector<1x16x16xf32> to vector<16x16xf32>
    %12 = vector.shape_cast %11 : vector<16x16xf32> to vector<1x16x16xf32>
    %13 = vector.shape_cast %12 : vector<1x16x16xf32> to vector<1x16x16xf32>
    %14 = vector.broadcast %13 : vector<1x16x16xf32> to vector<18x16x16xf32>
    %cst_7 = arith.constant dense<0.000000e+00> : vector<18x16x8xf32>
    %15 = tpu.matmul %14, %9, %cst_7 {dimension_numbers = #tpu.dot_dimension_numbers<[2], [1], [1], [2], [0, 0, 0, 1, 1, 2], [0], [0]>} : vector<18x16x16xf32>, vector<18x16x8xf32>, vector<18x16x8xf32> -> vector<18x16x8xf32>
    %16 = vector.extract_strided_slice %8 {offsets = [0, 0, 8], sizes = [18, 16, 8], strides = [1, 1, 1]} : vector<18x16x16xf32> to vector<18x16x8xf32>
    %c1 = arith.constant 1 : index
    %c0_8 = arith.constant 0 : index
    %c0_9 = arith.constant 0 : index
    %17 = vector.load %arg4[%c1, %c0_8, %c0_9] : memref<2x16x16xf32, #tpu.memory_space<vmem>>, vector<1x16x16xf32>
    %18 = vector.shape_cast %17 : vector<1x16x16xf32> to vector<16x16xf32>
    %19 = vector.shape_cast %18 : vector<16x16xf32> to vector<1x16x16xf32>
    %20 = vector.shape_cast %19 : vector<1x16x16xf32> to vector<1x16x16xf32>
    %21 = vector.broadcast %20 : vector<1x16x16xf32> to vector<18x16x16xf32>
    %cst_10 = arith.constant dense<0.000000e+00> : vector<18x16x8xf32>
    %22 = tpu.matmul %21, %16, %cst_10 {dimension_numbers = #tpu.dot_dimension_numbers<[2], [1], [1], [2], [0, 0, 0, 1, 1, 2], [0], [0]>} : vector<18x16x16xf32>, vector<18x16x8xf32>, vector<18x16x8xf32> -> vector<18x16x8xf32>
    %23 = arith.addf %15, %22 : vector<18x16x8xf32>
    %c0_11 = arith.constant 0 : index
    %c0_12 = arith.constant 0 : index
    %24 = vector.load %arg6[%c0_11, %c0_12] : memref<1x8xf32, #tpu.memory_space<vmem>>, vector<1x8xf32>
    %25 = vector.shape_cast %24 : vector<1x8xf32> to vector<1x1x8xf32>
    %26 = vector.broadcast %25 : vector<1x1x8xf32> to vector<18x16x8xf32>
    %27 = arith.mulf %23, %26 : vector<18x16x8xf32>
    %c0_13 = arith.constant 0 : index
    %c0_14 = arith.constant 0 : index
    %28 = vector.load %arg5[%c0_13, %c0_14] : memref<16x8xf32, #tpu.memory_space<vmem>>, vector<16x8xf32>
    %29 = vector.shape_cast %28 : vector<16x8xf32> to vector<1x16x8xf32>
    %30 = vector.broadcast %29 : vector<1x16x8xf32> to vector<18x16x8xf32>
    %31 = arith.addf %27, %30 : vector<18x16x8xf32>
    %cst_15 = arith.constant 0.000000e+00 : f32
    %32 = vector.broadcast %cst_15 : f32 to vector<18x16x8xf32>
    %33 = arith.maximumf %31, %32 : vector<18x16x8xf32>
    %34 = tpu.iota {dimensions = array<i32: 0>} : vector<18x1x1xi32>
    %35 = vector.broadcast %1 : i32 to vector<18x1x1xi32>
    %36 = arith.addi %35, %34 : vector<18x1x1xi32>
    %c1_i32 = arith.constant 1 : i32
    %37 = vector.broadcast %c1_i32 : i32 to vector<18x1x1xi32>
    %38 = arith.cmpi sge, %36, %37 : vector<18x1x1xi32>
    %c17_i32 = arith.constant 17 : i32
    %39 = vector.broadcast %c17_i32 : i32 to vector<18x1x1xi32>
    %40 = arith.cmpi slt, %36, %39 : vector<18x1x1xi32>
    %41 = arith.andi %38, %40 : vector<18x1x1xi1>
    %cst_16 = arith.constant 0.000000e+00 : f32
    %42 = vector.shape_cast %41 : vector<18x1x1xi1> to vector<18x1x1xi1>
    %43 = vector.broadcast %42 : vector<18x1x1xi1> to vector<18x16x8xi1>
    %44 = vector.broadcast %cst_16 : f32 to vector<18x16x8xf32>
    %45 = arith.select %43, %33, %44 : vector<18x16x8xi1>, vector<18x16x8xf32>
    %46 = vector.extract_strided_slice %45 {offsets = [0, 0, 0], sizes = [16, 16, 8], strides = [1, 1, 1]} : vector<18x16x8xf32> to vector<16x16x8xf32>
    %47 = vector.shape_cast %46 : vector<16x16x8xf32> to vector<256x8xf32>
    %c0_17 = arith.constant 0 : index
    %c0_18 = arith.constant 0 : index
    %48 = vector.load %arg7[%c0_17, %c0_18] : memref<24x8xf32, #tpu.memory_space<vmem>>, vector<8x8xf32>
    %cst_19 = arith.constant dense<0.000000e+00> : vector<256x8xf32>
    %49 = tpu.matmul %47, %48, %cst_19 {dimension_numbers = #tpu.dot_dimension_numbers<[1], [0], [0], [1], [0, 0, 1, 1], [], []>} : vector<256x8xf32>, vector<8x8xf32>, vector<256x8xf32> -> vector<256x8xf32>
    %50 = vector.extract_strided_slice %45 {offsets = [1, 0, 0], sizes = [16, 16, 8], strides = [1, 1, 1]} : vector<18x16x8xf32> to vector<16x16x8xf32>
    %51 = vector.shape_cast %50 : vector<16x16x8xf32> to vector<256x8xf32>
    %c8 = arith.constant 8 : index
    %c0_20 = arith.constant 0 : index
    %52 = vector.load %arg7[%c8, %c0_20] : memref<24x8xf32, #tpu.memory_space<vmem>>, vector<8x8xf32>
    %cst_21 = arith.constant dense<0.000000e+00> : vector<256x8xf32>
    %53 = tpu.matmul %51, %52, %cst_21 {dimension_numbers = #tpu.dot_dimension_numbers<[1], [0], [0], [1], [0, 0, 1, 1], [], []>} : vector<256x8xf32>, vector<8x8xf32>, vector<256x8xf32> -> vector<256x8xf32>
    %54 = arith.addf %49, %53 : vector<256x8xf32>
    %55 = vector.extract_strided_slice %45 {offsets = [2, 0, 0], sizes = [16, 16, 8], strides = [1, 1, 1]} : vector<18x16x8xf32> to vector<16x16x8xf32>
    %56 = vector.shape_cast %55 : vector<16x16x8xf32> to vector<256x8xf32>
    %c16 = arith.constant 16 : index
    %c0_22 = arith.constant 0 : index
    %57 = vector.load %arg7[%c16, %c0_22] : memref<24x8xf32, #tpu.memory_space<vmem>>, vector<8x8xf32>
    %cst_23 = arith.constant dense<0.000000e+00> : vector<256x8xf32>
    %58 = tpu.matmul %56, %57, %cst_23 {dimension_numbers = #tpu.dot_dimension_numbers<[1], [0], [0], [1], [0, 0, 1, 1], [], []>} : vector<256x8xf32>, vector<8x8xf32>, vector<256x8xf32> -> vector<256x8xf32>
    %59 = arith.addf %54, %58 : vector<256x8xf32>
    %c0_24 = arith.constant 0 : index
    %c0_25 = arith.constant 0 : index
    %60 = vector.load %arg8[%c0_24, %c0_25] : memref<1x8xf32, #tpu.memory_space<vmem>>, vector<1x8xf32>
    %61 = vector.broadcast %60 : vector<1x8xf32> to vector<256x8xf32>
    %62 = arith.mulf %59, %61 : vector<256x8xf32>
    %c0_26 = arith.constant 0 : index
    %c0_27 = arith.constant 0 : index
    %63 = vector.load %arg9[%c0_26, %c0_27] : memref<1x8xf32, #tpu.memory_space<vmem>>, vector<1x8xf32>
    %64 = vector.broadcast %63 : vector<1x8xf32> to vector<256x8xf32>
    %65 = arith.addf %62, %64 : vector<256x8xf32>
    %66 = vector.extract_strided_slice %4 {offsets = [1, 0, 0], sizes = [16, 16, 8], strides = [1, 1, 1]} : vector<18x16x8xf32> to vector<16x16x8xf32>
    %67 = vector.shape_cast %66 : vector<16x16x8xf32> to vector<256x8xf32>
    %68 = arith.addf %65, %67 : vector<256x8xf32>
    %cst_28 = arith.constant 0.000000e+00 : f32
    %69 = vector.broadcast %cst_28 : f32 to vector<256x8xf32>
    %70 = arith.maximumf %68, %69 : vector<256x8xf32>
    %71 = vector.shape_cast %70 : vector<256x8xf32> to vector<1x16x16x8xf32>
    %c0_29 = arith.constant 0 : index
    %c0_30 = arith.constant 0 : index
    %c0_31 = arith.constant 0 : index
    %c0_32 = arith.constant 0 : index
    %72 = vector.load %arg10[%c0_29, %c0_30, %c0_31, %c0_32] : memref<1x16x16x8xf32, #tpu.memory_space<vmem>>, vector<1x16x16x8xf32>
    tpu.vector_store %arg10[%c0_29, %c0_30, %c0_31, %c0_32], %71 {strides = array<i32>} : memref<1x16x16x8xf32, #tpu.memory_space<vmem>>, vector<1x16x16x8xf32>,
    return
  }
  func.func @transform_0(%arg0: i32, %arg1: i32) -> (i32, i32, i32, i32) {
    %c0_i32 = arith.constant 0 : i32
    %c0_i32_0 = arith.constant 0 : i32
    %c0_i32_1 = arith.constant 0 : i32
    %c0_i32_2 = arith.constant 0 : i32
    return %arg0, %c0_i32, %c0_i32_0, %c0_i32_1 : i32, i32, i32, i32
  }
  func.func @transform_1(%arg0: i32, %arg1: i32) -> (i32, i32) {
    %c0_i32 = arith.constant 0 : i32
    %c0_i32_0 = arith.constant 0 : i32
    %c0_i32_1 = arith.constant 0 : i32
    return %c0_i32, %c0_i32_0 : i32, i32
  }
  func.func @transform_2(%arg0: i32, %arg1: i32) -> (i32, i32, i32) {
    %c0_i32 = arith.constant 0 : i32
    %c0_i32_0 = arith.constant 0 : i32
    %c0_i32_1 = arith.constant 0 : i32
    %c0_i32_2 = arith.constant 0 : i32
    return %c0_i32, %c0_i32_0, %c0_i32_1 : i32, i32, i32
  }
  func.func @transform_3(%arg0: i32, %arg1: i32) -> (i32, i32) {
    %c0_i32 = arith.constant 0 : i32
    %c0_i32_0 = arith.constant 0 : i32
    %c0_i32_1 = arith.constant 0 : i32
    return %c0_i32, %c0_i32_0 : i32, i32
  }
  func.func @transform_4(%arg0: i32, %arg1: i32) -> (i32, i32) {
    %c0_i32 = arith.constant 0 : i32
    %c0_i32_0 = arith.constant 0 : i32
    %c0_i32_1 = arith.constant 0 : i32
    return %c0_i32, %c0_i32_0 : i32, i32
  }
  func.func @transform_5(%arg0: i32, %arg1: i32) -> (i32, i32) {
    %c0_i32 = arith.constant 0 : i32
    %c0_i32_0 = arith.constant 0 : i32
    %c0_i32_1 = arith.constant 0 : i32
    return %c0_i32, %c0_i32_0 : i32, i32
  }
  func.func @transform_6(%arg0: i32, %arg1: i32) -> (i32, i32) {
    %c0_i32 = arith.constant 0 : i32
    %c0_i32_0 = arith.constant 0 : i32
    %c0_i32_1 = arith.constant 0 : i32
    return %c0_i32, %c0_i32_0 : i32, i32
  }
  func.func @transform_7(%arg0: i32, %arg1: i32) -> (i32, i32) {
    %c0_i32 = arith.constant 0 : i32
    %c0_i32_0 = arith.constant 0 : i32
    %c0_i32_1 = arith.constant 0 : i32
    return %c0_i32, %c0_i32_0 : i32, i32
  }
  func.func @transform_8(%arg0: i32, %arg1: i32) -> (i32, i32, i32, i32) {
    %c0_i32 = arith.constant 0 : i32
    %c0_i32_0 = arith.constant 0 : i32
    %c0_i32_1 = arith.constant 0 : i32
    return %arg0, %arg1, %c0_i32, %c0_i32_0 : i32, i32, i32, i32
  }
}

</mosaic_0001>

<bundles_post_ra>
// kernel: _lambda_.1
= control target key start
LH: loop header
LB: loop body
LE: loop exit
PB: predicated region body
PF: predicated region fallthrough
CT: control target
= control target key end

     0   :  { %s6015_s27 = smov 0   ;;  %s6017_s28 = smov 0   ;;  %s7119_s0 = inlined_call_operand.vmem [shape: f32[2,18,16,8], index: 0, kind: input, shape index: {}]   ;;  %s7120_s1 = inlined_call_operand.vmem [shape: f32[8,16], index: 1, kind: input, shape index: {}]   ;;  %s7121_s2 = inlined_call_operand.vmem [shape: f32[2,16,16], index: 2, kind: input, shape index: {}]   ;;  %s7122_s3 = inlined_call_operand.vmem [shape: f32[16,8], index: 3, kind: input, shape index: {}]   ;;  %s7123_s4 = inlined_call_operand.vmem [shape: f32[1,8], index: 4, kind: input, shape index: {}]   ;;  %s7124_s5 = inlined_call_operand.vmem [shape: f32[24,8], index: 5, kind: input, shape index: {}]   ;;  %s7125_s6 = inlined_call_operand.vmem [shape: f32[1,8], index: 6, kind: input, shape index: {}]   ;;  %s7126_s7 = inlined_call_operand.vmem [shape: f32[1,8], index: 7, kind: input, shape index: {}]   ;;  %s7127_s8 = inlined_call_operand.vmem [shape: f32[2,16,16,8], index: 8, kind: output, shape index: {}]  }
   0x1   :  { %s6019_s29 = smov 0  }
   0x2 LB: > { %s30_s30 = sadd.s32 1, %s5962_s28  ;;  %p4933_p0 = scmp.ge.s32.totalorder %s5966_s29, 1  ;;  %s5966_s29 = sphi %s6019_s29, %s18_s29   ;;  %s5962_s28 = sphi %s6017_s28, %s7129_s28   ;;  %s5958_s27 = sphi %s6015_s27, %s7128_s27  }
   0x3   : > { %p32_p1 = scmp.ge.s32.totalorder %s30_s30, 2  ;;  %p276_p2 = scmp.lt.s32.totalorder %s5966_s29, 3 }
   0x5   : > { %s7131_s30 = smov (%p32_p1, %s30_s30), 0  ;;  %p277_p3 = pnand %p4933_p0, %p276_p2 }
   0x6   : > { %p315_p4 = scmp.lt.s32.totalorder (!%p277_p3), %s5958_s27, 1  ;;  %s5968_s19 = smov (!%p277_p3), 120  }
   0x7   : > { %280 = sbr.rel (%p277_p3) target bundleno = 938 (0x3aa), region = 52 }
   0xc   : > { %v370_v0 = vld [vmem:[%s7120_s1] sm:$0xff]  ;;  %s7133_s27 = smov (!%p315_p4, %s5958_s27), 1  ;;  %vm371_vm0 = vcmask 64512   ;;  %vm738_vm1 = vcmask 130048   ;;  %v6126_v38 = vld [vmem:[%s7121_s2 + $0x10] sm:$0xff]  ;;  %v6134_v41 = vld [vmem:[%s7121_s2 + $0x8] sm:$0xff] }
   0xd   : > { %5425 = vmatprep.subr.mxu0 %v370_v0  ;;  %5883 = vmatprep.subr.mxu1 %v370_v0  ;;  %s5885_s11 = smul.u32 288, %s7133_s27  ;;  %v6119_v37 = vld [vmem:[%s7121_s2] sm:$0xff]  ;;  %s5144_s23 = sshll.u32 %s7133_s27, 8 }
   0xe   : > { %5426 = vmatpush3.msra.mxu0 %v370_v0  ;;  %5884 = vmatpush3.msra.mxu1 %v370_v0  ;;  %s6894_s25 = scalar_lea.vmem %s7127_s8, %s5144_s23 }
   0xf   : > { %s6042_s14 = scalar_lea.vmem %s7119_s0, %s5885_s11 }
  0x10   : > { %v334_v1 = vld [vmem:[%s6042_s14] sm:$0xff]  ;;  %v335_v2 = vld [vmem:[%s6042_s14 + $0x8] sm:$0xff]  ;;  %v336_v3 = vld [vmem:[%s6042_s14 + $0x10] sm:$0xff] }
  0x11   : > { %5427 = vmatprep.mubr.msk.f32.mxu0 %vm371_vm0, %v334_v1  ;;  %v337_v4 = vld [vmem:[%s6042_s14 + $0x18] sm:$0xff]  ;;  %v338_v5 = vld [vmem:[%s6042_s14 + $0x20] sm:$0xff]  ;;  %v339_v7 = vld [vmem:[%s6042_s14 + $0x28] sm:$0xff] }
  0x12   : > { %5428 = vmatmul.mubr.msk.f32.vlgmr.msra.gmra.mxu0 %vm371_vm0, %v335_v2  ;;  %v354_v6 = vld [vmem:[%s6042_s14 + $0xa0] sm:$0xff]  ;;  %v355_v8 = vld [vmem:[%s6042_s14 + $0xa8] sm:$0xff]  ;;  %v356_v9 = vld [vmem:[%s6042_s14 + $0xb0] sm:$0xff] }
  0x13   : > { %5430 = vmatprep.mubr.msk.f32.mxu0 %vm371_vm0, %v336_v3  ;;  %5457 = vmatprep.mubr.msk.f32.mxu1 %vm371_vm0, %v354_v6  ;;  %v340_v10 = vld [vmem:[%s6042_s14 + $0x30] sm:$0xff]  ;;  %v357_v11 = vld [vmem:[%s6042_s14 + $0xb8] sm:$0xff]  ;;  %v358_v12 = vld [vmem:[%s6042_s14 + $0xc0] sm:$0xff] }
  0x14   : > { %5458 = vmatmul.mubr.msk.f32.vlgmr.msra.gmra.mxu1 %vm371_vm0, %v355_v8  ;;  %v341_v13 = vld [vmem:[%s6042_s14 + $0x38] sm:$0xff]  ;;  %v342_v14 = vld [vmem:[%s6042_s14 + $0x40] sm:$0xff]  ;;  %v359_v15 = vld [vmem:[%s6042_s14 + $0xc8] sm:$0xff] }
  0x15   : > { %5460 = vmatprep.mubr.msk.f32.mxu1 %vm371_vm0, %v356_v9  ;;  %v360_v16 = vld [vmem:[%s6042_s14 + $0xd0] sm:$0xff]  ;;  %v343_v17 = vld [vmem:[%s6042_s14 + $0x48] sm:$0xff]  ;;  %v361_v19 = vld [vmem:[%s6042_s14 + $0xd8] sm:$0xff] }
  0x16   : > { %5431 = vmatmul.mubr.msk.f32.gmra.mxu0 %vm371_vm0, %v337_v4  ;;  %v344_v18 = vld [vmem:[%s6042_s14 + $0x50] sm:$0xff]  ;;  %v362_v20 = vld [vmem:[%s6042_s14 + $0xe0] sm:$0xff]  ;;  %v345_v21 = vld [vmem:[%s6042_s14 + $0x58] sm:$0xff] }
  0x17   : > { %5433 = vmatprep.mubr.msk.f32.mxu0 %vm371_vm0, %v338_v5  ;;  %v346_v22 = vld [vmem:[%s6042_s14 + $0x60] sm:$0xff]  ;;  %v363_v23 = vld [vmem:[%s6042_s14 + $0xe8] sm:$0xff]  ;;  %v364_v24 = vld [vmem:[%s6042_s14 + $0xf0] sm:$0xff] }
  0x18   : > { %5461 = vmatmul.mubr.msk.f32.gmra.mxu1 %vm371_vm0, %v357_v11  ;;  %v347_v25 = vld [vmem:[%s6042_s14 + $0x68] sm:$0xff]  ;;  %v348_v26 = vld [vmem:[%s6042_s14 + $0x70] sm:$0xff]  ;;  %v365_v27 = vld [vmem:[%s6042_s14 + $0xf8] sm:$0xff] }
  0x19   : > { %5463 = vmatprep.mubr.msk.f32.mxu1 %vm371_vm0, %v358_v12  ;;  %v366_v28 = vld [vmem:[%s6042_s14 + $0x100] sm:$0xff]  ;;  %v349_v29 = vld [vmem:[%s6042_s14 + $0x78] sm:$0xff]  ;;  %v367_v31 = vld [vmem:[%s6042_s14 + $0x108] sm:$0xff] }
  0x1a   : > { %5434 = vmatmul.mubr.msk.f32.gmra.mxu0 %vm371_vm0, %v339_v7  ;;  %v350_v30 = vld [vmem:[%s6042_s14 + $0x80] sm:$0xff]  ;;  %v368_v32 = vld [vmem:[%s6042_s14 + $0x110] sm:$0xff]  ;;  %v351_v33 = vld [vmem:[%s6042_s14 + $0x88] sm:$0xff] }
  0x1b   : > { %5436 = vmatprep.mubr.msk.f32.mxu0 %vm371_vm0, %v340_v10  ;;  %v352_v34 = vld [vmem:[%s6042_s14 + $0x90] sm:$0xff]  ;;  %v369_v35 = vld [vmem:[%s6042_s14 + $0x118] sm:$0xff] }
  0x1c   : > { %5464 = vmatmul.mubr.msk.f32.gmra.mxu1 %vm371_vm0, %v359_v15  ;;  %v353_v36 = vld [vmem:[%s6042_s14 + $0x98] sm:$0xff] }
  0x1d   : > { %5466 = vmatprep.mubr.msk.f32.mxu1 %vm371_vm0, %v360_v16  ;;  %v6272_v15 = vld [vmem:[%s7121_s2 + $0x18] sm:$0xff] }
  0x1e   : > { %5437 = vmatmul.mubr.msk.f32.gmra.mxu0 %vm371_vm0, %v341_v13 }
  0x1f   : > { %5439 = vmatprep.mubr.msk.f32.mxu0 %vm371_vm0, %v342_v14 }
  0x20   : > { %5467 = vmatmul.mubr.msk.f32.gmra.mxu1 %vm371_vm0, %v361_v19 }
  0x21   : > { %5469 = vmatprep.mubr.msk.f32.mxu1 %vm371_vm0, %v362_v20 }
  0x22   : > { %5440 = vmatmul.mubr.msk.f32.gmra.mxu0 %vm371_vm0, %v343_v17 }
  0x23   : > { %5442 = vmatprep.mubr.msk.f32.mxu0 %vm371_vm0, %v344_v18 }
  0x24   : > { %5470 = vmatmul.mubr.msk.f32.gmra.mxu1 %vm371_vm0, %v363_v23 }
  0x25   : > { %5472 = vmatprep.mubr.msk.f32.mxu1 %vm371_vm0, %v364_v24 }
  0x26   : > { %5443 = vmatmul.mubr.msk.f32.gmra.mxu0 %vm371_vm0, %v345_v21 }
  0x27   : > { %5445 = vmatprep.mubr.msk.f32.mxu0 %vm371_vm0, %v346_v22 }
  0x28   : > { %5473 = vmatmul.mubr.msk.f32.gmra.mxu1 %vm371_vm0, %v365_v27 }
  0x29   : > { %5475 = vmatprep.mubr.msk.f32.mxu1 %vm371_vm0, %v366_v28 }
  0x2a   : > { %5446 = vmatmul.mubr.msk.f32.gmra.mxu0 %vm371_vm0, %v347_v25 }
  0x2b   : > { %5448 = vmatprep.mubr.msk.f32.mxu0 %vm371_vm0, %v348_v26 }
  0x2c   : > { %5476 = vmatmul.mubr.msk.f32.gmra.mxu1 %vm371_vm0, %v367_v31 }
  0x2d   : > { %5478 = vmatprep.mubr.msk.f32.mxu1 %vm371_vm0, %v368_v32 }
  0x2e   : > { %5449 = vmatmul.mubr.msk.f32.gmra.mxu0 %vm371_vm0, %v349_v29 }
  0x2f   : > { %5451 = vmatprep.mubr.msk.f32.mxu0 %vm371_vm0, %v350_v30 }
  0x30   : > { %5479 = vmatmul.mubr.msk.f32.gmra.mxu1 %vm371_vm0, %v369_v35 }
  0x31   : > { %5485 = vmatprep.mubr.msk.f32.mxu1 %vm738_vm1, %v6126_v38 }
  0x32   : > { %5452 = vmatmul.mubr.msk.f32.gmra.mxu0 %vm371_vm0, %v351_v33 }
  0x33   : > { %5454 = vmatprep.mubr.msk.f32.mxu0 %vm371_vm0, %v352_v34 }
  0x36   : > { %5455 = vmatmul.mubr.msk.f32.gmra.mxu0 %vm371_vm0, %v353_v36 }
  0x37   : > { %5611 = vmatprep.mubr.msk.f32.mxu0 %vm738_vm1, %v6119_v37 }
  0xd2   : > { %v5429_v39 = vpop.f32.mrf.mxu0 }
  0xd3   : > { %734 = vrot.lane.b32.xlu0 %v5429_v39, %s5968_s19  ;;  %5607 = vmatprep.subr.mxu0 %v5429_v39 }
  0xd4   : > { %v546_v40 = vpop.f32.mrf.mxu0  ;;  %5608 = vmatpush3.msra.mxu0 %v5429_v39  ;;  %v6145_v44 = vpop.f32.mrf.mxu1 }
  0xd5   : > { %5609 = vmatprep.subr.mxu0 %v546_v40 }
  0xd6   : > { %v6136_v42 = vpop.f32.mrf.mxu0  ;;  %5610 = vmatpush3.msra.mxu0 %v546_v40  ;;  %v6149_v46 = vpop.f32.mrf.mxu1 }
  0xd7   : > { %732 = vrot.lane.b32.xlu0 %v546_v40, %s5968_s19  ;;  %824 = vrot.lane.b32.xlu1 %v6136_v42, %s5968_s19 }
  0xd8   : > { %v6141_v43 = vpop.f32.mrf.mxu0  ;;  %5612 = vmatmul.mubr.msk.f32.vlgmr.msra.gmra.mxu0 %vm738_vm1, %v6134_v41  ;;  %v6154_v48 = vpop.f32.mrf.mxu1 }
  0xd9   : > { %5625 = vmatprep.mubr.msk.f32.mxu0 %vm738_vm1, %v6119_v37 }
  0xda   : > { %v5435_v45 = vpop.f32.mrf.mxu0  ;;  %v6165_v51 = vpop.f32.mrf.mxu1 }
  0xdb   : > { %822 = vrot.lane.b32.xlu1 %v6141_v43, %s5968_s19  ;;  %907 = vrot.lane.b32.xlu0 %v5435_v45, %s5968_s19 }
  0xdc   : > { %v566_v47 = vpop.f32.mrf.mxu0  ;;  %5621 = vmatprep.subr.mxu0 %v5435_v45  ;;  %v5465_v54 = vpop.f32.mrf.mxu1 }
  0xdd   : > { %5622 = vmatpush3.msra.mxu0 %v5435_v45 }
  0xde   : > { %v6156_v49 = vpop.f32.mrf.mxu0  ;;  %5623 = vmatprep.subr.mxu0 %v566_v47  ;;  %v666_v57 = vpop.f32.mrf.mxu1 }
  0xdf   : > { %905 = vrot.lane.b32.xlu1 %v566_v47, %s5968_s19  ;;  %990 = vrot.lane.b32.xlu0 %v6156_v49, %s5968_s19 }
  0xe0   : > { %v6161_v50 = vpop.f32.mrf.mxu0  ;;  %5624 = vmatpush3.msra.mxu0 %v566_v47  ;;  %v6186_v60 = vpop.f32.mrf.mxu1 }
  0xe1   : > { %5626 = vmatmul.mubr.msk.f32.vlgmr.msra.gmra.mxu0 %vm738_vm1, %v6134_v41 }
  0xe2   : > { %v5441_v52 = vpop.f32.mrf.mxu0  ;;  %5639 = vmatprep.mubr.msk.f32.mxu0 %vm738_vm1, %v6119_v37  ;;  %v6195_v63 = vpop.f32.mrf.mxu1 }
  0xe3   : > { %988 = vrot.lane.b32.xlu1 %v6161_v50, %s5968_s19  ;;  %1073 = vrot.lane.b32.xlu0 %v5441_v52, %s5968_s19 }
  0xe4   : > { %v586_v53 = vpop.f32.mrf.mxu0  ;;  %5635 = vmatprep.subr.mxu0 %v5441_v52  ;;  %v5471_v2 = vpop.f32.mrf.mxu1 }
  0xe5   : > { %5636 = vmatpush3.msra.mxu0 %v5441_v52 }
  0xe6   : > { %v6172_v55 = vpop.f32.mrf.mxu0  ;;  %5637 = vmatprep.subr.mxu0 %v586_v53  ;;  %v686_v4 = vpop.f32.mrf.mxu1 }
  0xe7   : > { %1071 = vrot.lane.b32.xlu1 %v586_v53, %s5968_s19  ;;  %1156 = vrot.lane.b32.xlu0 %v6172_v55, %s5968_s19 }
  0xe8   : > { %v6177_v56 = vpop.f32.mrf.mxu0  ;;  %5638 = vmatpush3.msra.mxu0 %v586_v53  ;;  %v6222_v6 = vpop.f32.mrf.mxu1 }
  0xe9   : > { %5640 = vmatmul.mubr.msk.f32.vlgmr.msra.gmra.mxu0 %vm738_vm1, %v6134_v41 }
  0xea   : > { %v5447_v58 = vpop.f32.mrf.mxu0  ;;  %5653 = vmatprep.mubr.msk.f32.mxu0 %vm738_vm1, %v6119_v37  ;;  %v6233_v7 = vpop.f32.mrf.mxu1 }
  0xeb   : > { %1154 = vrot.lane.b32.xlu1 %v6177_v56, %s5968_s19  ;;  %1239 = vrot.lane.b32.xlu0 %v5447_v58, %s5968_s19 }
  0xec   : > { %v606_v59 = vpop.f32.mrf.mxu0  ;;  %5649 = vmatprep.subr.mxu0 %v5447_v58  ;;  %v5477_v8 = vpop.f32.mrf.mxu1 }
  0xed   : > { %5650 = vmatpush3.msra.mxu0 %v5447_v58 }
  0xee   : > { %v6188_v61 = vpop.f32.mrf.mxu0  ;;  %5651 = vmatprep.subr.mxu0 %v606_v59  ;;  %v706_v9 = vpop.f32.mrf.mxu1 }
  0xef   : > { %1237 = vrot.lane.b32.xlu1 %v606_v59, %s5968_s19  ;;  %1322 = vrot.lane.b32.xlu0 %v6188_v61, %s5968_s19 }
  0xf0   : > { %v6193_v62 = vpop.f32.mrf.mxu0  ;;  %5652 = vmatpush3.msra.mxu0 %v606_v59  ;;  %v6260_v10 = vpop.f32.mrf.mxu1 }
  0xf1   : > { %5654 = vmatmul.mubr.msk.f32.vlgmr.msra.gmra.mxu0 %vm738_vm1, %v6134_v41 }
  0xf2   : > { %v5453_v0 = vpop.f32.mrf.mxu0  ;;  %5667 = vmatprep.mubr.msk.f32.mxu0 %vm738_vm1, %v6119_v37  ;;  %v6265_v11 = vpop.f32.mrf.mxu1 }
  0xf3   : > { %1320 = vrot.lane.b32.xlu1 %v6193_v62, %s5968_s19  ;;  %1405 = vrot.lane.b32.xlu0 %v5453_v0, %s5968_s19 }
  0xf4   : > { %v626_v1 = vpop.f32.mrf.mxu0  ;;  %5663 = vmatprep.subr.mxu0 %v5453_v0 }
  0xf5   : > { %5664 = vmatpush3.msra.mxu0 %v5453_v0 }
  0xf6   : > { %v6204_v3 = vpop.f32.mrf.mxu0  ;;  %5665 = vmatprep.subr.mxu0 %v626_v1 }
  0xf7   : > { %1403 = vrot.lane.b32.xlu1 %v626_v1, %s5968_s19  ;;  %1488 = vrot.lane.b32.xlu0 %v6204_v3, %s5968_s19 }
  0xf8   : > { %5666 = vmatpush3.msra.mxu0 %v626_v1  ;;  %v6212_v5 = vpop.f32.mrf.mxu0 }
  0xf9   : > { %5677 = vmatprep.subr.mxu0 %v6145_v44  ;;  %5668 = vmatmul.mubr.msk.f32.vlgmr.msra.gmra.mxu0 %vm738_vm1, %v6134_v41 }
  0xfa   : > { %5678 = vmatpush3.msra.mxu0 %v6145_v44  ;;  %5681 = vmatprep.mubr.msk.f32.mxu0 %vm738_vm1, %v6119_v37 }
  0xfb   : > { %1486 = vrot.lane.b32.xlu1 %v6212_v5, %s5968_s19  ;;  %1571 = vrot.lane.b32.xlu0 %v6145_v44, %s5968_s19 }
  0xfc   : > { %5679 = vmatprep.subr.mxu0 %v6149_v46 }
  0xfd   : > { %5680 = vmatpush3.msra.mxu0 %v6149_v46 }
  0xfe   : > { %5691 = vmatprep.subr.mxu0 %v5465_v54  ;;  %5682 = vmatmul.mubr.msk.f32.vlgmr.msra.gmra.mxu0 %vm738_vm1, %v6134_v41 }
  0xff   : > { %1569 = vrot.lane.b32.xlu1 %v6149_v46, %s5968_s19  ;;  %1654 = vrot.lane.b32.xlu0 %v6154_v48, %s5968_s19 }
 0x100   : > { %5692 = vmatpush3.msra.mxu0 %v5465_v54  ;;  %5695 = vmatprep.mubr.msk.f32.mxu0 %vm738_vm1, %v6119_v37 }
 0x101   : > { %5693 = vmatprep.subr.mxu0 %v666_v57 }
 0x102   : > { %5694 = vmatpush3.msra.mxu0 %v666_v57 }
 0x103   : > { %1652 = vrot.lane.b32.xlu1 %v6165_v51, %s5968_s19  ;;  %1737 = vrot.lane.b32.xlu0 %v5465_v54, %s5968_s19 }
 0x104   : > { %5705 = vmatprep.subr.mxu0 %v5471_v2  ;;  %5696 = vmatmul.mubr.msk.f32.vlgmr.msra.gmra.mxu0 %vm738_vm1, %v6134_v41 }
 0x105   : > { %5706 = vmatpush3.msra.mxu0 %v5471_v2  ;;  %5709 = vmatprep.mubr.msk.f32.mxu0 %vm738_vm1, %v6119_v37 }
 0x106   : > { %5707 = vmatprep.subr.mxu0 %v686_v4 }
 0x107   : > { %1735 = vrot.lane.b32.xlu1 %v666_v57, %s5968_s19  ;;  %1820 = vrot.lane.b32.xlu0 %v6186_v60, %s5968_s19 }
 0x108   : > { %5708 = vmatpush3.msra.mxu0 %v686_v4 }
 0x109   : > { %5719 = vmatprep.subr.mxu0 %v5477_v8  ;;  %5710 = vmatmul.mubr.msk.f32.vlgmr.msra.gmra.mxu0 %vm738_vm1, %v6134_v41 }
 0x10a   : > { %5720 = vmatpush3.msra.mxu0 %v5477_v8  ;;  %5723 = vmatprep.mubr.msk.f32.mxu0 %vm738_vm1, %v6119_v37 }
 0x10b   : > { %1818 = vrot.lane.b32.xlu1 %v6195_v63, %s5968_s19  ;;  %1903 = vrot.lane.b32.xlu0 %v5471_v2, %s5968_s19 }
 0x10c   : > { %5721 = vmatprep.subr.mxu0 %v706_v9 }
 0x10d   : > { %5722 = vmatpush3.msra.mxu0 %v706_v9 }
 0x10e   : > { %5724 = vmatmul.mubr.msk.f32.vlgmr.msra.gmra.mxu0 %vm738_vm1, %v6134_v41 }
 0x10f   : > { %1901 = vrot.lane.b32.xlu1 %v686_v4, %s5968_s19  ;;  %1986 = vrot.lane.b32.xlu0 %v6222_v6, %s5968_s19 }
 0x113   : > { %1984 = vrot.lane.b32.xlu1 %v6233_v7, %s5968_s19  ;;  %2069 = vrot.lane.b32.xlu0 %v5477_v8, %s5968_s19 }
 0x117   : > { %2067 = vrot.lane.b32.xlu1 %v706_v9, %s5968_s19  ;;  %2152 = vrot.lane.b32.xlu0 %v6260_v10, %s5968_s19 }
 0x11b   : > { %2150 = vrot.lane.b32.xlu1 %v6265_v11, %s5968_s19 }
 0x145   : > { %v735_v12 = vpop.permute.xlu0 %734 }
 0x146   : > { %5481 = vmatprep.subr.mxu1 %v735_v12 }
 0x147   : > { %5482 = vmatpush3.msra.mxu1 %v735_v12 }
 0x149   : > { %v733_v13 = vpop.permute.xlu0 %732  ;;  %v825_v14 = vpop.permute.xlu1 %824 }
 0x14a   : > { %5483 = vmatprep.subr.mxu1 %v733_v13 }
 0x14b   : > { %5484 = vmatpush3.msra.mxu1 %v733_v13 }
 0x14c   : > { %5486 = vmatmul.mubr.msk.f32.vlgmr.msra.gmra.mxu1 %vm738_vm1, %v6272_v15  ;;  %5488 = vmatprep.subr.mxu1 %v825_v14 }
 0x14d   : > { %5489 = vmatpush3.msra.mxu1 %v825_v14  ;;  %v823_v16 = vpop.permute.xlu1 %822  ;;  %5492 = vmatprep.mubr.msk.f32.mxu1 %vm738_vm1, %v6126_v38  ;;  %v908_v17 = vpop.permute.xlu0 %907 }
 0x14e   : > { %5490 = vmatprep.subr.mxu1 %v823_v16 }
 0x14f   : > { %5491 = vmatpush3.msra.mxu1 %v823_v16 }
 0x150   : > { %5493 = vmatmul.mubr.msk.f32.vlgmr.msra.gmra.mxu1 %vm738_vm1, %v6272_v15  ;;  %5495 = vmatprep.subr.mxu1 %v908_v17 }
 0x151   : > { %5496 = vmatpush3.msra.mxu1 %v908_v17  ;;  %v906_v18 = vpop.permute.xlu1 %905  ;;  %5499 = vmatprep.mubr.msk.f32.mxu1 %vm738_vm1, %v6126_v38  ;;  %v991_v19 = vpop.permute.xlu0 %990 }
 0x152   : > { %5497 = vmatprep.subr.mxu1 %v906_v18 }
 0x153   : > { %5498 = vmatpush3.msra.mxu1 %v906_v18 }
 0x154   : > { %5500 = vmatmul.mubr.msk.f32.vlgmr.msra.gmra.mxu1 %vm738_vm1, %v6272_v15  ;;  %5502 = vmatprep.subr.mxu1 %v991_v19 }
 0x155   : > { %5503 = vmatpush3.msra.mxu1 %v991_v19  ;;  %v989_v20 = vpop.permute.xlu1 %988  ;;  %5506 = vmatprep.mubr.msk.f32.mxu1 %vm738_vm1, %v6126_v38  ;;  %v1074_v21 = vpop.permute.xlu0 %1073 }
 0x156   : > { %5504 = vmatprep.subr.mxu1 %v989_v20 }
 0x157   : > { %5505 = vmatpush3.msra.mxu1 %v989_v20 }
 0x158   : > { %5507 = vmatmul.mubr.msk.f32.vlgmr.msra.gmra.mxu1 %vm738_vm1, %v6272_v15  ;;  %5509 = vmatprep.subr.mxu1 %v1074_v21 }
 0x159   : > { %5510 = vmatpush3.msra.mxu1 %v1074_v21  ;;  %v1072_v22 = vpop.permute.xlu1 %1071  ;;  %5513 = vmatprep.mubr.msk.f32.mxu1 %vm738_vm1, %v6126_v38  ;;  %v1157_v23 = vpop.permute.xlu0 %1156 }
 0x15a   : > { %5511 = vmatprep.subr.mxu1 %v1072_v22 }
 0x15b   : > { %5512 = vmatpush3.msra.mxu1 %v1072_v22 }
 0x15c   : > { %5514 = vmatmul.mubr.msk.f32.vlgmr.msra.gmra.mxu1 %vm738_vm1, %v6272_v15  ;;  %5516 = vmatprep.subr.mxu1 %v1157_v23 }
 0x15d   : > { %5517 = vmatpush3.msra.mxu1 %v1157_v23  ;;  %v1155_v24 = vpop.permute.xlu1 %1154  ;;  %5520 = vmatprep.mubr.msk.f32.mxu1 %vm738_vm1, %v6126_v38  ;;  %v1240_v25 = vpop.permute.xlu0 %1239 }
 0x15e   : > { %5518 = vmatprep.subr.mxu1 %v1155_v24 }
 0x15f   : > { %5519 = vmatpush3.msra.mxu1 %v1155_v24 }
 0x160   : > { %5521 = vmatmul.mubr.msk.f32.vlgmr.msra.gmra.mxu1 %vm738_vm1, %v6272_v15  ;;  %5523 = vmatprep.subr.mxu1 %v1240_v25 }
 0x161   : > { %5524 = vmatpush3.msra.mxu1 %v1240_v25  ;;  %v1238_v26 = vpop.permute.xlu1 %1237  ;;  %5527 = vmatprep.mubr.msk.f32.mxu1 %vm738_vm1, %v6126_v38  ;;  %v1323_v27 = vpop.permute.xlu0 %1322 }
 0x162   : > { %5525 = vmatprep.subr.mxu1 %v1238_v26 }
 0x163   : > { %5526 = vmatpush3.msra.mxu1 %v1238_v26 }
 0x164   : > { %5528 = vmatmul.mubr.msk.f32.vlgmr.msra.gmra.mxu1 %vm738_vm1, %v6272_v15  ;;  %5530 = vmatprep.subr.mxu1 %v1323_v27 }
 0x165   : > { %5531 = vmatpush3.msra.mxu1 %v1323_v27  ;;  %v1321_v28 = vpop.permute.xlu1 %1320  ;;  %5534 = vmatprep.mubr.msk.f32.mxu1 %vm738_vm1, %v6126_v38  ;;  %v1406_v29 = vpop.permute.xlu0 %1405 }
 0x166   : > { %5532 = vmatprep.subr.mxu1 %v1321_v28 }
 0x167   : > { %5533 = vmatpush3.msra.mxu1 %v1321_v28 }
 0x168   : > { %5535 = vmatmul.mubr.msk.f32.vlgmr.msra.gmra.mxu1 %vm738_vm1, %v6272_v15  ;;  %5537 = vmatprep.subr.mxu1 %v1406_v29 }
 0x169   : > { %5538 = vmatpush3.msra.mxu1 %v1406_v29  ;;  %v1404_v30 = vpop.permute.xlu1 %1403  ;;  %5541 = vmatprep.mubr.msk.f32.mxu1 %vm738_vm1, %v6126_v38  ;;  %v1489_v31 = vpop.permute.xlu0 %1488 }
 0x16a   : > { %5539 = vmatprep.subr.mxu1 %v1404_v30 }
 0x16b   : > { %5540 = vmatpush3.msra.mxu1 %v1404_v30 }
 0x16c   : > { %5542 = vmatmul.mubr.msk.f32.vlgmr.msra.gmra.mxu1 %vm738_vm1, %v6272_v15  ;;  %5544 = vmatprep.subr.mxu1 %v1489_v31 }
 0x16d   : > { %5545 = vmatpush3.msra.mxu1 %v1489_v31  ;;  %v1487_v32 = vpop.permute.xlu1 %1486  ;;  %5548 = vmatprep.mubr.msk.f32.mxu1 %vm738_vm1, %v6126_v38  ;;  %v1572_v33 = vpop.permute.xlu0 %1571 }
 0x16e   : > { %5546 = vmatprep.subr.mxu1 %v1487_v32 }
 0x16f   : > { %5547 = vmatpush3.msra.mxu1 %v1487_v32 }
 0x170   : > { %5549 = vmatmul.mubr.msk.f32.vlgmr.msra.gmra.mxu1 %vm738_vm1, %v6272_v15  ;;  %5551 = vmatprep.subr.mxu1 %v1572_v33 }
 0x171   : > { %5552 = vmatpush3.msra.mxu1 %v1572_v33  ;;  %v1570_v34 = vpop.permute.xlu1 %1569  ;;  %v1655_v35 = vpop.permute.xlu0 %1654  ;;  %5555 = vmatprep.mubr.msk.f32.mxu1 %vm738_vm1, %v6126_v38 }
 0x172   : > { %5553 = vmatprep.subr.mxu1 %v1570_v34 }
 0x173   : > { %5554 = vmatpush3.msra.mxu1 %v1570_v34  ;;  %v6479_v34 = vld [vmem:[%s7123_s4] ss:$0 sm:$0xff] }
 0x174   : > { %5556 = vmatmul.mubr.msk.f32.vlgmr.msra.gmra.mxu1 %vm738_vm1, %v6272_v15  ;;  %5558 = vmatprep.subr.mxu1 %v1655_v35 }
 0x175   : > { %5559 = vmatpush3.msra.mxu1 %v1655_v35  ;;  %v1653_v36 = vpop.permute.xlu1 %1652  ;;  %v1738_v39 = vpop.permute.xlu0 %1737  ;;  %5562 = vmatprep.mubr.msk.f32.mxu1 %vm738_vm1, %v6126_v38 }
 0x176   : > { %5560 = vmatprep.subr.mxu1 %v1653_v36 }
 0x177   : > { %5561 = vmatpush3.msra.mxu1 %v1653_v36 }
 0x178   : > { %5563 = vmatmul.mubr.msk.f32.vlgmr.msra.gmra.mxu1 %vm738_vm1, %v6272_v15  ;;  %5565 = vmatprep.subr.mxu1 %v1738_v39 }
 0x179   : > { %5566 = vmatpush3.msra.mxu1 %v1738_v39  ;;  %v1736_v40 = vpop.permute.xlu1 %1735  ;;  %v1821_v44 = vpop.permute.xlu0 %1820  ;;  %5569 = vmatprep.mubr.msk.f32.mxu1 %vm738_vm1, %v6126_v38 }
 0x17a   : > { %5567 = vmatprep.subr.mxu1 %v1736_v40 }
 0x17b   : > { %5568 = vmatpush3.msra.mxu1 %v1736_v40 }
 0x17c   : > { %5570 = vmatmul.mubr.msk.f32.vlgmr.msra.gmra.mxu1 %vm738_vm1, %v6272_v15  ;;  %5572 = vmatprep.subr.mxu1 %v1821_v44 }
 0x17d   : > { %5573 = vmatpush3.msra.mxu1 %v1821_v44  ;;  %v1819_v45 = vpop.permute.xlu1 %1818  ;;  %v1904_v46 = vpop.permute.xlu0 %1903  ;;  %5576 = vmatprep.mubr.msk.f32.mxu1 %vm738_vm1, %v6126_v38  ;;  %v6486_v44 = vld [vmem:[%s7122_s3] sm:$0xff] }
 0x17e   : > { %5574 = vmatprep.subr.mxu1 %v1819_v45 }
 0x17f   : > { %5575 = vmatpush3.msra.mxu1 %v1819_v45 }
 0x180   : > { %5577 = vmatmul.mubr.msk.f32.vlgmr.msra.gmra.mxu1 %vm738_vm1, %v6272_v15  ;;  %5579 = vmatprep.subr.mxu1 %v1904_v46 }
 0x181   : > { %5580 = vmatpush3.msra.mxu1 %v1904_v46  ;;  %v1902_v47 = vpop.permute.xlu1 %1901  ;;  %v1987_v52 = vpop.permute.xlu0 %1986  ;;  %5583 = vmatprep.mubr.msk.f32.mxu1 %vm738_vm1, %v6126_v38 }
 0x182   : > { %5581 = vmatprep.subr.mxu1 %v1902_v47 }
 0x183   : > { %5582 = vmatpush3.msra.mxu1 %v1902_v47  ;;  %v6491_v47 = vld [vmem:[%s7122_s3 + $0x8] sm:$0xff] }
 0x184   : > { %5584 = vmatmul.mubr.msk.f32.vlgmr.msra.gmra.mxu1 %vm738_vm1, %v6272_v15  ;;  %5586 = vmatprep.subr.mxu1 %v1987_v52 }
 0x185   : > { %5587 = vmatpush3.msra.mxu1 %v1987_v52  ;;  %v1985_v53 = vpop.permute.xlu1 %1984  ;;  %v2070_v54 = vpop.permute.xlu0 %2069  ;;  %5590 = vmatprep.mubr.msk.f32.mxu1 %vm738_vm1, %v6126_v38 }
 0x186   : > { %5588 = vmatprep.subr.mxu1 %v1985_v53 }
 0x187   : > { %5589 = vmatpush3.msra.mxu1 %v1985_v53 }
 0x188   : > { %5591 = vmatmul.mubr.msk.f32.vlgmr.msra.gmra.mxu1 %vm738_vm1, %v6272_v15  ;;  %5593 = vmatprep.subr.mxu1 %v2070_v54 }
 0x189   : > { %5594 = vmatpush3.msra.mxu1 %v2070_v54  ;;  %v2068_v57 = vpop.permute.xlu1 %2067  ;;  %v2153_v58 = vpop.permute.xlu0 %2152  ;;  %5597 = vmatprep.mubr.msk.f32.mxu1 %vm738_vm1, %v6126_v38 }
 0x18a   : > { %5595 = vmatprep.subr.mxu1 %v2068_v57 }
 0x18b   : > { %5596 = vmatpush3.msra.mxu1 %v2068_v57 }
 0x18c   : > { %5598 = vmatmul.mubr.msk.f32.vlgmr.msra.gmra.mxu1 %vm738_vm1, %v6272_v15  ;;  %5600 = vmatprep.subr.mxu1 %v2153_v58 }
 0x18d   : > { %5601 = vmatpush3.msra.mxu1 %v2153_v58  ;;  %v2151_v59 = vpop.permute.xlu1 %2150  ;;  %5604 = vmatprep.mubr.msk.f32.mxu1 %vm738_vm1, %v6126_v38 }
 0x18e   : > { %5602 = vmatprep.subr.mxu1 %v2151_v59 }
 0x18f   : > { %5603 = vmatpush3.msra.mxu1 %v2151_v59 }
 0x190   : > { %5605 = vmatmul.mubr.msk.f32.vlgmr.msra.gmra.mxu1 %vm738_vm1, %v6272_v15  ;;  %5614 = vmatprep.subr.mxu1 %v6136_v42 }
 0x191   : > { %5615 = vmatpush3.msra.mxu1 %v6136_v42  ;;  %5618 = vmatprep.mubr.msk.f32.mxu1 %vm738_vm1, %v6119_v37 }
 0x192   : > { %5616 = vmatprep.subr.mxu1 %v6141_v43 }
 0x193   : > { %5617 = vmatpush3.msra.mxu1 %v6141_v43  ;;  %v3848_v43 = vld [vmem:[%s7124_s5] sm:$0xff] }
 0x194   : > { %5619 = vmatmul.mubr.msk.f32.vlgmr.msra.gmra.mxu1 %vm738_vm1, %v6134_v41  ;;  %5628 = vmatprep.subr.mxu1 %v6156_v49 }
 0x195   : > { %5629 = vmatpush3.msra.mxu1 %v6156_v49  ;;  %5632 = vmatprep.mubr.msk.f32.mxu1 %vm738_vm1, %v6119_v37 }
 0x196   : > { %5630 = vmatprep.subr.mxu1 %v6161_v50 }
 0x197   : > { %5631 = vmatpush3.msra.mxu1 %v6161_v50 }
 0x198   : > { %5633 = vmatmul.mubr.msk.f32.vlgmr.msra.gmra.mxu1 %vm738_vm1, %v6134_v41  ;;  %5642 = vmatprep.subr.mxu1 %v6172_v55  ;;  %v5613_v38 = vpop.f32.mrf.mxu0 }
 0x199   : > { %5643 = vmatpush3.msra.mxu1 %v6172_v55  ;;  %5646 = vmatprep.mubr.msk.f32.mxu1 %vm738_vm1, %v6119_v37 }
 0x19a   : > { %5644 = vmatprep.subr.mxu1 %v6177_v56  ;;  %v2303_v42 = vpop.f32.mrf.mxu0 }
 0x19b   : > { %5645 = vmatpush3.msra.mxu1 %v6177_v56 }
 0x19c   : > { %5647 = vmatmul.mubr.msk.f32.vlgmr.msra.gmra.mxu1 %vm738_vm1, %v6134_v41  ;;  %5656 = vmatprep.subr.mxu1 %v6188_v61 }
 0x19d   : > { %5657 = vmatpush3.msra.mxu1 %v6188_v61  ;;  %5660 = vmatprep.mubr.msk.f32.mxu1 %vm738_vm1, %v6119_v37 }
 0x19e   : > { %5658 = vmatprep.subr.mxu1 %v6193_v62 }
 0x19f   : > { %5659 = vmatpush3.msra.mxu1 %v6193_v62 }
 0x1a0   : > { %5661 = vmatmul.mubr.msk.f32.vlgmr.msra.gmra.mxu1 %vm738_vm1, %v6134_v41  ;;  %5670 = vmatprep.subr.mxu1 %v6204_v3 }
 0x1a1   : > { %5671 = vmatpush3.msra.mxu1 %v6204_v3  ;;  %5674 = vmatprep.mubr.msk.f32.mxu1 %vm738_vm1, %v6119_v37  ;;  %v5627_v23 = vpop.f32.mrf.mxu0 }
 0x1a2   : > { %5672 = vmatprep.subr.mxu1 %v6212_v5 }
 0x1a3   : > { %5673 = vmatpush3.msra.mxu1 %v6212_v5  ;;  %v2453_v26 = vpop.f32.mrf.mxu0 }
 0x1a4   : > { %5675 = vmatmul.mubr.msk.f32.vlgmr.msra.gmra.mxu1 %vm738_vm1, %v6134_v41  ;;  %5684 = vmatprep.subr.mxu1 %v6154_v48 }
 0x1a5   : > { %5685 = vmatpush3.msra.mxu1 %v6154_v48  ;;  %5688 = vmatprep.mubr.msk.f32.mxu1 %vm738_vm1, %v6119_v37  ;;  %v5969_v48 = vmov 0.0  }
 0x1a6   : > { %5686 = vmatprep.subr.mxu1 %v6165_v51 }
 0x1a7   : > { %5687 = vmatpush3.msra.mxu1 %v6165_v51 }
 0x1a8   : > { %5689 = vmatmul.mubr.msk.f32.vlgmr.msra.gmra.mxu1 %vm738_vm1, %v6134_v41  ;;  %5698 = vmatprep.subr.mxu1 %v6186_v60 }
 0x1a9   : > { %5699 = vmatpush3.msra.mxu1 %v6186_v60  ;;  %5702 = vmatprep.mubr.msk.f32.mxu1 %vm738_vm1, %v6119_v37  ;;  %v5641_v30 = vpop.f32.mrf.mxu0 }
 0x1aa   : > { %5700 = vmatprep.subr.mxu1 %v6195_v63 }
 0x1ab   : > { %5701 = vmatpush3.msra.mxu1 %v6195_v63  ;;  %v2603_v45 = vpop.f32.mrf.mxu0 }
 0x1ac   : > { %5703 = vmatmul.mubr.msk.f32.vlgmr.msra.gmra.mxu1 %vm738_vm1, %v6134_v41  ;;  %5712 = vmatprep.subr.mxu1 %v6222_v6 }
 0x1ad   : > { %5713 = vmatpush3.msra.mxu1 %v6222_v6  ;;  %5716 = vmatprep.mubr.msk.f32.mxu1 %vm738_vm1, %v6119_v37 }
 0x1ae   : > { %5714 = vmatprep.subr.mxu1 %v6233_v7 }
 0x1af   : > { %5715 = vmatpush3.msra.mxu1 %v6233_v7 }
 0x1b0   : > { %5717 = vmatmul.mubr.msk.f32.vlgmr.msra.gmra.mxu1 %vm738_vm1, %v6134_v41  ;;  %5726 = vmatprep.subr.mxu1 %v6260_v10 }
 0x1b1   : > { %5727 = vmatpush3.msra.mxu1 %v6260_v10  ;;  %5730 = vmatprep.mubr.msk.f32.mxu1 %vm738_vm1, %v6119_v37  ;;  %v3849_v37 = vld [vmem:[%s7124_s5 + $0x8] sm:$0xff] }
 0x1b2   : > { %5728 = vmatprep.subr.mxu1 %v6265_v11  ;;  %5733 = vmatprep.subr.mxu0 %v3849_v37 }
 0x1b3   : > { %5729 = vmatpush3.msra.mxu1 %v6265_v11  ;;  %5734 = vmatpush3.msra.mxu0 %v3849_v37  ;;  %v5655_v37 = vpop.f32.mrf.mxu0 }
 0x1b4   : > { %5731 = vmatmul.mubr.msk.f32.vlgmr.msra.gmra.mxu1 %vm738_vm1, %v6134_v41  ;;  %5783 = vmatprep.subr.mxu1 %v3848_v43  ;;  %v6427_v41 = vld [vmem:[%s7124_s5 + $0x10] sm:$0xff] }
 0x1b5   : > { %5784 = vmatpush3.msra.mxu1 %v3848_v43  ;;  %5785 = vmatprep.mubr.f32.mxu1 %v5969_v48 }
 0x1b6   : > { %5833 = vmatprep.subr.mxu0 %v6427_v41 }
 0x1b8   : > { %5786 = vmatmul.mubr.f32.vlgmr.msra.gmra.mxu1 %v5969_v48 }
 0x20c   : > { %v5487_v49 = vpop.f32.mrf.mxu1 }
 0x20e   : > { %v811_v50 = vpop.f32.mrf.mxu1 }
 0x210   : > { %v5494_v51 = vpop.f32.mrf.mxu1 }
 0x212   : > { %v894_v55 = vpop.f32.mrf.mxu1 }
 0x214   : > { %v5501_v56 = vpop.f32.mrf.mxu1 }
 0x215   : > { %v2459_v33 = vadd.f32 %v5627_v23, %v5501_v56 }
 0x216   : > { %v977_v60 = vpop.f32.mrf.mxu1 }
 0x217   : > { %v2454_v29 = vadd.f32 %v2453_v26, %v977_v60  ;;  %v3599_v53 = vmul.f32 %v6479_v34, %v2459_v33 }
 0x218   : > { %v5508_v61 = vpop.f32.mrf.mxu1 }
 0x219   : > { %v3598_v36 = vmul.f32 %v6479_v34, %v2454_v29 }
 0x21a   : > { %v1060_v62 = vpop.f32.mrf.mxu1 }
 0x21b   : > { %v3636_v59 = vadd.f32 %v6486_v44, %v3598_v36 }
 0x21c   : > { %v5515_v63 = vpop.f32.mrf.mxu1 }
 0x21d   : > { %v2609_v56 = vadd.f32 %v5641_v30, %v5515_v63 }
 0x21e   : > { %v1143_v0 = vpop.f32.mrf.mxu1 }
 0x21f   : > { %v2604_v38 = vadd.f32 %v2603_v45, %v1143_v0 }
 0x220   : > { %v6430_v1 = vpop.f32.mrf.mxu1 }
 0x222   : > { %v1226_v2 = vpop.f32.mrf.mxu1 }
 0x224   : > { %v6432_v3 = vpop.f32.mrf.mxu1 }
 0x226   : > { %v6434_v4 = vpop.f32.mrf.mxu1 }
 0x228   : > { %v6436_v5 = vpop.f32.mrf.mxu1 }
 0x22a   : > { %v6438_v6 = vpop.f32.mrf.mxu1 }
 0x22c   : > { %v6440_v7 = vpop.f32.mrf.mxu1 }
 0x22e   : > { %v6442_v8 = vpop.f32.mrf.mxu1 }
 0x230   : > { %v6444_v9 = vpop.f32.mrf.mxu1 }
 0x232   : > { %v6446_v10 = vpop.f32.mrf.mxu1 }
 0x234   : > { %v6448_v11 = vpop.f32.mrf.mxu1 }
 0x236   : > { %v6450_v12 = vpop.f32.mrf.mxu1 }
 0x238   : > { %v6452_v13 = vpop.f32.mrf.mxu1 }
 0x23a   : > { %v6454_v14 = vpop.f32.mrf.mxu1 }
 0x23c   : > { %v6456_v15 = vpop.f32.mrf.mxu1 }
 0x23e   : > { %v6458_v16 = vpop.f32.mrf.mxu1 }
 0x240   : > { %v6460_v17 = vpop.f32.mrf.mxu1 }
 0x242   : > { %v6462_v18 = vpop.f32.mrf.mxu1 }
 0x244   : > { %v6464_v19 = vpop.f32.mrf.mxu1 }
 0x246   : > { %v6466_v20 = vpop.f32.mrf.mxu1 }
 0x248   : > { %v6468_v21 = vpop.f32.mrf.mxu1 }
 0x24a   : > { %v6470_v22 = vpop.f32.mrf.mxu1 }
 0x24c   : > { %v6472_v24 = vpop.f32.mrf.mxu1 }
 0x24e   : > { %v6474_v25 = vpop.f32.mrf.mxu1 }
 0x250   : > { %v5606_v27 = vpop.f32.mrf.mxu1 }
 0x251   : > { %v3602_v27 = vmul.f32 %v6479_v34, %v2604_v38 }
 0x252   : > { %v2222_v28 = vpop.f32.mrf.mxu1 }
 0x253   : > { %v3640_v33 = vadd.f32 %v6486_v44, %v3602_v27 }
 0x254   : > { %v5620_v31 = vpop.f32.mrf.mxu1 }
 0x255   : > { %v2384_v32 = vadd.f32 %v5620_v31, %v5494_v51 }
 0x256   : > { %v2378_v35 = vpop.f32.mrf.mxu1 }
 0x257   : > { %v3597_v39 = vmul.f32 %v6479_v34, %v2384_v32  ;;  %v2379_v40 = vadd.f32 %v2378_v35, %v894_v55  ;;  %v3637_v55 = vadd.f32 %v6491_v47, %v3599_v53  ;;  %v6537_v53 = vmax.f32 %v3640_v33, 0.0 }
 0x258   : > { %v5634_v46 = vpop.f32.mrf.mxu1 }
 0x259   : > { %v3596_v52 = vmul.f32 %v6479_v34, %v2379_v40  ;;  %v3635_v54 = vadd.f32 %v6491_v47, %v3597_v39  ;;  %v2534_v57 = vadd.f32 %v5634_v46, %v5508_v61  ;;  %v6501_v61 = vmax.f32 %v3636_v59, 0.0 }
 0x25a   : > { %v2528_v58 = vpop.f32.mrf.mxu1  ;;  %v6513_v63 = vmax.f32 %v3637_v55, 0.0 }
 0x25b   : > { %v3634_v42 = vadd.f32 %v6486_v44, %v3596_v52  ;;  %v2529_v43 = vadd.f32 %v2528_v58, %v1060_v62  ;;  %v3671_v60 = vmax.f32 %v3635_v54, 0.0  ;;  %v3601_v23 = vmul.f32 %v6479_v34, %v2534_v57  ;;  %v2753_v62 = vpop.f32.mrf.mxu0 }
 0x25c   : > { %v5648_v49 = vpop.f32.mrf.mxu1  ;;  %v2754_v35 = vadd.f32 %v2753_v62, %v6434_v4 }
 0x25d   : > { %v3670_v50 = vmax.f32 %v3634_v42, 0.0  ;;  %v3600_v51 = vmul.f32 %v6479_v34, %v2529_v43  ;;  %v3639_v30 = vadd.f32 %v6491_v47, %v3601_v23  ;;  %v2684_v31 = vadd.f32 %v5648_v49, %v6430_v1  ;;  %v5669_v40 = vpop.f32.mrf.mxu0 }
 0x25e   : > { %v2678_v26 = vpop.f32.mrf.mxu1  ;;  %v2759_v1 = vadd.f32 %v5655_v37, %v6432_v3  ;;  %v3606_v54 = vmul.f32 %v6479_v34, %v2754_v35 }
 0x25f   : > { %v3638_v0 = vadd.f32 %v6486_v44, %v3600_v51  ;;  %v2679_v28 = vadd.f32 %v2678_v26, %v1226_v2  ;;  %5735 = vmatprep.mubr.msk.f32.mxu0 %vm371_vm0, %v3670_v50  ;;  %5788 = vmatprep.mubr.msk.f32.mxu1 %vm371_vm0, %v3670_v50  ;;  %v3603_v2 = vmul.f32 %v6479_v34, %v2609_v56  ;;  %v6534_v4 = vmax.f32 %v3639_v30, 0.0  ;;  %v2903_v59 = vpop.f32.mrf.mxu0 }
 0x260   : > { %v5662_v29 = vpop.f32.mrf.mxu1  ;;  %5736 = vmatmul.mubr.msk.f32.vlgmr.msra.gmra.mxu0 %vm371_vm0, %v3671_v60  ;;  %5789 = vmatmul.mubr.msk.f32.gmra.mxu1 %vm371_vm0, %v3671_v60  ;;  %v3605_v46 = vmul.f32 %v6479_v34, %v2684_v31  ;;  %v3607_v42 = vmul.f32 %v6479_v34, %v2759_v1  ;;  %v3644_v49 = vadd.f32 %v6486_v44, %v3606_v54 }
 0x261   : > { %5738 = vmatprep.mubr.msk.f32.mxu0 %vm371_vm0, %v6501_v61  ;;  %5791 = vmatprep.mubr.msk.f32.mxu1 %vm371_vm0, %v6501_v61  ;;  %v6521_v36 = vmax.f32 %v3638_v0, 0.0  ;;  %v3604_v39 = vmul.f32 %v6479_v34, %v2679_v28  ;;  %v2834_v43 = vadd.f32 %v5662_v29, %v6436_v5  ;;  %v2904_v50 = vadd.f32 %v2903_v59, %v6442_v8  ;;  %v5683_v56 = vpop.f32.mrf.mxu0 }
 0x262   : > { %v2828_v32 = vpop.f32.mrf.mxu1  ;;  %5834 = vmatpush3.msra.mxu0 %v6427_v41  ;;  %v3641_v41 = vadd.f32 %v6491_v47, %v3603_v2  ;;  %v3645_v5 = vadd.f32 %v6491_v47, %v3607_v42  ;;  %v2909_v8 = vadd.f32 %v5669_v40, %v6440_v7  ;;  %v6577_v0 = vmax.f32 %v3644_v49, 0.0 }
 0x263   : > { %v3642_v57 = vadd.f32 %v6486_v44, %v3604_v39  ;;  %v2829_v58 = vadd.f32 %v2828_v32, %v6438_v6  ;;  %v3643_v6 = vadd.f32 %v6491_v47, %v3605_v46  ;;  %v3609_v26 = vmul.f32 %v6479_v34, %v2834_v43  ;;  %v3053_v2 = vpop.f32.mrf.mxu0 }
 0x264   : > { %v5676_v45 = vpop.f32.mrf.mxu1  ;;  %5739 = vmatmul.mubr.msk.f32.gmra.mxu0 %vm371_vm0, %v6513_v63  ;;  %5792 = vmatmul.mubr.msk.f32.gmra.mxu1 %vm371_vm0, %v6513_v63  ;;  %v6552_v3 = vmax.f32 %v3641_v41, 0.0  ;;  %v3610_v28 = vmul.f32 %v6479_v34, %v2904_v50  ;;  %v6592_v7 = vmax.f32 %v3645_v5, 0.0  ;;  %v3611_v31 = vmul.f32 %v6479_v34, %v2909_v8 }
 0x265   : > { %5741 = vmatprep.mubr.msk.f32.mxu0 %vm371_vm0, %v6521_v36  ;;  %5794 = vmatprep.mubr.msk.f32.mxu1 %vm371_vm0, %v6521_v36  ;;  %v6559_v51 = vmax.f32 %v3642_v57, 0.0  ;;  %v3608_v55 = vmul.f32 %v6479_v34, %v2829_v58  ;;  %v6574_v23 = vmax.f32 %v3643_v6, 0.0  ;;  %v2984_v32 = vadd.f32 %v5676_v45, %v6444_v9  ;;  %v5697_v1 = vpop.f32.mrf.mxu0 }
 0x266   : > { %v2978_v52 = vpop.f32.mrf.mxu1  ;;  %v3648_v35 = vadd.f32 %v6486_v44, %v3610_v28  ;;  %v3054_v39 = vadd.f32 %v3053_v2, %v6450_v12  ;;  %v3649_v9 = vadd.f32 %v6491_v47, %v3611_v31  ;;  %v3059_v12 = vadd.f32 %v5683_v56, %v6448_v11 }
 0x267   : > { %v3646_v62 = vadd.f32 %v6486_v44, %v3608_v55  ;;  %v2979_v29 = vadd.f32 %v2978_v52, %v6446_v10  ;;  %v3647_v10 = vadd.f32 %v6491_v47, %v3609_v26  ;;  %v3613_v52 = vmul.f32 %v6479_v34, %v2984_v32  ;;  %v3203_v6 = vpop.f32.mrf.mxu0 }
 0x268   : > { %v6542_v38 = vpop.f32.mrf.mxu1  ;;  %5742 = vmatmul.mubr.msk.f32.gmra.mxu0 %vm371_vm0, %v6534_v4  ;;  %5795 = vmatmul.mubr.msk.f32.gmra.mxu1 %vm371_vm0, %v6534_v4  ;;  %v6617_v57 = vmax.f32 %v3648_v35, 0.0  ;;  %v3614_v58 = vmul.f32 %v6479_v34, %v3054_v39  ;;  %v6630_v11 = vmax.f32 %v3649_v9, 0.0  ;;  %v3615_v43 = vmul.f32 %v6479_v34, %v3059_v12 }
 0x269   : > { %5744 = vmatprep.mubr.msk.f32.mxu0 %vm371_vm0, %v6537_v53  ;;  %5797 = vmatprep.mubr.msk.f32.mxu1 %vm371_vm0, %v6537_v53  ;;  %v6601_v40 = vmax.f32 %v3646_v62, 0.0  ;;  %v3612_v41 = vmul.f32 %v6479_v34, %v2979_v29  ;;  %v6614_v45 = vmax.f32 %v3647_v10, 0.0  ;;  %v3651_v49 = vadd.f32 %v6491_v47, %v3613_v52  ;;  %v5711_v5 = vpop.f32.mrf.mxu0 }
 0x26a   : > { %v3128_v37 = vpop.f32.mrf.mxu1  ;;  %v3204_v50 = vadd.f32 %v3203_v6, %v6458_v16  ;;  %v3209_v16 = vadd.f32 %v5697_v1, %v6456_v15 }
 0x26b   : > { %v3650_v59 = vadd.f32 %v6486_v44, %v3612_v41  ;;  %v3129_v42 = vadd.f32 %v3128_v37, %v6454_v14  ;;  %v3134_v14 = vadd.f32 %v6542_v38, %v6452_v13  ;;  %v3652_v37 = vadd.f32 %v6486_v44, %v3614_v58  ;;  %v3353_v2 = vpop.f32.mrf.mxu0 }
 0x26c   : > { %v6562_v60 = vpop.f32.mrf.mxu1  ;;  %5745 = vmatmul.mubr.msk.f32.gmra.mxu0 %vm371_vm0, %v6552_v3  ;;  %5798 = vmatmul.mubr.msk.f32.gmra.mxu1 %vm371_vm0, %v6552_v3  ;;  %v3653_v13 = vadd.f32 %v6491_v47, %v3615_v43  ;;  %v6651_v38 = vmax.f32 %v3651_v49, 0.0  ;;  %v3618_v28 = vmul.f32 %v6479_v34, %v3204_v50  ;;  %v3619_v31 = vmul.f32 %v6479_v34, %v3209_v16 }
 0x26d   : > { %5747 = vmatprep.mubr.msk.f32.mxu0 %vm371_vm0, %v6559_v51  ;;  %5800 = vmatprep.mubr.msk.f32.mxu1 %vm371_vm0, %v6559_v51  ;;  %v6638_v55 = vmax.f32 %v3650_v59, 0.0  ;;  %v3616_v56 = vmul.f32 %v6479_v34, %v3129_v42  ;;  %v3617_v8 = vmul.f32 %v6479_v34, %v3134_v14  ;;  %v6654_v26 = vmax.f32 %v3652_v37, 0.0  ;;  %v5725_v41 = vpop.f32.mrf.mxu0 }
 0x26e   : > { %v3278_v27 = vpop.f32.mrf.mxu1  ;;  %v6667_v15 = vmax.f32 %v3653_v13, 0.0  ;;  %v3354_v32 = vadd.f32 %v3353_v2, %v6466_v20  ;;  %v3359_v20 = vadd.f32 %v5711_v5, %v6464_v19  ;;  %v3509_v14 = vadd.f32 %v5725_v41, %v6472_v24 }
 0x26f   : > { %v3654_v62 = vadd.f32 %v6486_v44, %v3616_v56  ;;  %v3279_v29 = vadd.f32 %v3278_v27, %v6462_v18  ;;  %v3655_v10 = vadd.f32 %v6491_v47, %v3617_v8  ;;  %v3284_v18 = vadd.f32 %v6562_v60, %v6460_v17 }
 0x270   : > { %v6582_v30 = vpop.f32.mrf.mxu1  ;;  %5748 = vmatmul.mubr.msk.f32.gmra.mxu0 %vm371_vm0, %v6574_v23  ;;  %5801 = vmatmul.mubr.msk.f32.gmra.mxu1 %vm371_vm0, %v6574_v23  ;;  %v3656_v27 = vadd.f32 %v6486_v44, %v3618_v28  ;;  %v3657_v17 = vadd.f32 %v6491_v47, %v3619_v31  ;;  %v3622_v9 = vmul.f32 %v6479_v34, %v3354_v32 }
 0x271   : > { %5750 = vmatprep.mubr.msk.f32.mxu0 %vm371_vm0, %v6577_v0  ;;  %5803 = vmatprep.mubr.msk.f32.mxu1 %vm371_vm0, %v6577_v0  ;;  %v6675_v35 = vmax.f32 %v3654_v62, 0.0  ;;  %v3620_v39 = vmul.f32 %v6479_v34, %v3279_v29  ;;  %v6688_v60 = vmax.f32 %v3655_v10, 0.0  ;;  %v3621_v1 = vmul.f32 %v6479_v34, %v3284_v18 }
 0x272   : > { %v6597_v33 = vpop.f32.mrf.mxu1  ;;  %v3693_v19 = vmax.f32 %v3657_v17, 0.0  ;;  %v3623_v58 = vmul.f32 %v6479_v34, %v3359_v20  ;;  %v3627_v5 = vmul.f32 %v6479_v34, %v3509_v14 }
 0x273   : > { %v3658_v12 = vadd.f32 %v6486_v44, %v3620_v39  ;;  %v3429_v52 = vadd.f32 %v6597_v33, %v6470_v22  ;;  %v3659_v59 = vadd.f32 %v6491_v47, %v3621_v1  ;;  %v3434_v22 = vadd.f32 %v6582_v30, %v6468_v21 }
 0x274   : > { %5751 = vmatmul.mubr.msk.f32.gmra.mxu0 %vm371_vm0, %v6592_v7  ;;  %5804 = vmatmul.mubr.msk.f32.gmra.mxu1 %vm371_vm0, %v6592_v7  ;;  %v5732_v46 = vpop.f32.mrf.mxu1  ;;  %v3660_v33 = vadd.f32 %v6486_v44, %v3622_v9  ;;  %v3661_v49 = vadd.f32 %v6491_v47, %v3623_v58  ;;  %v3665_v8 = vadd.f32 %v6491_v47, %v3627_v5 }
 0x275   : > { %5753 = vmatprep.mubr.msk.f32.mxu0 %vm371_vm0, %v6601_v40  ;;  %5806 = vmatprep.mubr.msk.f32.mxu1 %vm371_vm0, %v6601_v40  ;;  %v6691_v46 = vmax.f32 %v3656_v27, 0.0  ;;  %v3694_v6 = vmax.f32 %v3658_v12, 0.0  ;;  %v3624_v43 = vmul.f32 %v6479_v34, %v3429_v52  ;;  %v3695_v21 = vmax.f32 %v3659_v59, 0.0 }
 0x276   : > { %v3578_v54 = vpop.f32.mrf.mxu1  ;;  %v3625_v30 = vmul.f32 %v6479_v34, %v3434_v22  ;;  %v3696_v37 = vmax.f32 %v3660_v33, 0.0  ;;  %v3697_v56 = vmax.f32 %v3661_v49, 0.0 }
 0x277   : > { %v3503_v54 = vpop.f32.mrf.mxu0  ;;  %v3662_v50 = vadd.f32 %v6486_v44, %v3624_v43 }
 0x278   : > { %5754 = vmatmul.mubr.msk.f32.gmra.mxu0 %vm371_vm0, %v6614_v45  ;;  %5807 = vmatmul.mubr.msk.f32.gmra.mxu1 %vm371_vm0, %v6614_v45  ;;  %v3504_v42 = vadd.f32 %v3503_v54, %v6474_v25  ;;  %v3663_v24 = vadd.f32 %v6491_v47, %v3625_v30  ;;  %v6871_v30 = vld [vmem:[%s7125_s6] ss:$0 sm:$0xff] }
 0x279   : > { %5756 = vmatprep.mubr.msk.f32.mxu0 %vm371_vm0, %v6617_v57  ;;  %5809 = vmatprep.mubr.msk.f32.mxu1 %vm371_vm0, %v6617_v57  ;;  %v3698_v16 = vmax.f32 %v3662_v50, 0.0  ;;  %v6876_v50 = vld [vmem:[%s7126_s7] ss:$0 sm:$0xff] }
 0x27a   : > { %v3626_v25 = vmul.f32 %v6479_v34, %v3504_v42  ;;  %v3699_v28 = vmax.f32 %v3663_v24, 0.0  ;;  %v3701_v34 = vmax.f32 %v3665_v8, 0.0 }
 0x27c   : > { %5757 = vmatmul.mubr.msk.f32.gmra.mxu0 %vm371_vm0, %v6630_v11  ;;  %5810 = vmatmul.mubr.msk.f32.gmra.mxu1 %vm371_vm0, %v6630_v11  ;;  %v3664_v13 = vadd.f32 %v6486_v44, %v3626_v25  ;;  %v5787_v44 = vpop.f32.mrf.mxu1 }
 0x27d   : > { %5759 = vmatprep.mubr.msk.f32.mxu0 %vm371_vm0, %v6638_v55  ;;  %5812 = vmatprep.mubr.msk.f32.mxu1 %vm371_vm0, %v6638_v55 }
 0x27e   : > { %v3700_v62 = vmax.f32 %v3664_v13, 0.0 }
 0x280   : > { %5760 = vmatmul.mubr.msk.f32.gmra.mxu0 %vm371_vm0, %v6651_v38  ;;  %5813 = vmatmul.mubr.msk.f32.gmra.mxu1 %vm371_vm0, %v6651_v38 }
 0x281   : > { %5762 = vmatprep.mubr.msk.f32.mxu0 %vm371_vm0, %v6654_v26  ;;  %5815 = vmatprep.mubr.msk.f32.mxu1 %vm371_vm0, %v6654_v26 }
 0x284   : > { %5763 = vmatmul.mubr.msk.f32.gmra.mxu0 %vm371_vm0, %v6667_v15  ;;  %5816 = vmatmul.mubr.msk.f32.gmra.mxu1 %vm371_vm0, %v6667_v15 }
 0x285   : > { %5765 = vmatprep.mubr.msk.f32.mxu0 %vm371_vm0, %v6675_v35  ;;  %5818 = vmatprep.mubr.msk.f32.mxu1 %vm371_vm0, %v6675_v35 }
 0x288   : > { %5766 = vmatmul.mubr.msk.f32.gmra.mxu0 %vm371_vm0, %v6688_v60  ;;  %5819 = vmatmul.mubr.msk.f32.gmra.mxu1 %vm371_vm0, %v6688_v60 }
 0x289   : > { %5768 = vmatprep.mubr.msk.f32.mxu0 %vm371_vm0, %v6691_v46  ;;  %5821 = vmatprep.mubr.msk.f32.mxu1 %vm371_vm0, %v6691_v46 }
 0x28c   : > { %5769 = vmatmul.mubr.msk.f32.gmra.mxu0 %vm371_vm0, %v3693_v19  ;;  %5822 = vmatmul.mubr.msk.f32.gmra.mxu1 %vm371_vm0, %v3693_v19 }
 0x28d   : > { %5771 = vmatprep.mubr.msk.f32.mxu0 %vm371_vm0, %v3694_v6  ;;  %5824 = vmatprep.mubr.msk.f32.mxu1 %vm371_vm0, %v3694_v6 }
 0x290   : > { %5772 = vmatmul.mubr.msk.f32.gmra.mxu0 %vm371_vm0, %v3695_v21  ;;  %5825 = vmatmul.mubr.msk.f32.gmra.mxu1 %vm371_vm0, %v3695_v21 }
 0x291   : > { %5774 = vmatprep.mubr.msk.f32.mxu0 %vm371_vm0, %v3696_v37  ;;  %5827 = vmatprep.mubr.msk.f32.mxu1 %vm371_vm0, %v3696_v37 }
 0x294   : > { %5775 = vmatmul.mubr.msk.f32.gmra.mxu0 %vm371_vm0, %v3697_v56  ;;  %5828 = vmatmul.mubr.msk.f32.gmra.mxu1 %vm371_vm0, %v3697_v56 }
 0x295   : > { %5777 = vmatprep.mubr.msk.f32.mxu0 %vm371_vm0, %v3698_v16  ;;  %5830 = vmatprep.mubr.msk.f32.mxu1 %vm371_vm0, %v3698_v16 }
 0x298   : > { %5778 = vmatmul.mubr.msk.f32.gmra.mxu0 %vm371_vm0, %v3699_v28  ;;  %5831 = vmatmul.mubr.msk.f32.gmra.mxu1 %vm371_vm0, %v3699_v28 }
 0x299   : > { %5780 = vmatprep.mubr.msk.f32.mxu0 %vm371_vm0, %v3700_v62 }
 0x29c   : > { %5781 = vmatmul.mubr.msk.f32.gmra.mxu0 %vm371_vm0, %v3701_v34 }
 0x29d   : > { %5835 = vmatprep.mubr.msk.f32.mxu0 %vm371_vm0, %v6501_v61 }
 0x2a0   : > { %5836 = vmatmul.mubr.msk.f32.vlgmr.msra.gmra.mxu0 %vm371_vm0, %v6513_v63  ;;  %v4243_v63 = vpop.f32.mrf.mxu1 }
 0x2a1   : > { %5838 = vmatprep.mubr.msk.f32.mxu0 %vm371_vm0, %v6521_v36 }
 0x2a4   : > { %5839 = vmatmul.mubr.msk.f32.gmra.mxu0 %vm371_vm0, %v6534_v4 }
 0x2a5   : > { %5841 = vmatprep.mubr.msk.f32.mxu0 %vm371_vm0, %v6537_v53 }
 0x2a8   : > { %5842 = vmatmul.mubr.msk.f32.gmra.mxu0 %vm371_vm0, %v6552_v3 }
 0x2a9   : > { %5844 = vmatprep.mubr.msk.f32.mxu0 %vm371_vm0, %v6559_v51 }
 0x2ac   : > { %5845 = vmatmul.mubr.msk.f32.gmra.mxu0 %vm371_vm0, %v6574_v23 }
 0x2ad   : > { %5847 = vmatprep.mubr.msk.f32.mxu0 %vm371_vm0, %v6577_v0 }
 0x2b0   : > { %5848 = vmatmul.mubr.msk.f32.gmra.mxu0 %vm371_vm0, %v6592_v7 }
 0x2b1   : > { %5850 = vmatprep.mubr.msk.f32.mxu0 %vm371_vm0, %v6601_v40 }
 0x2b4   : > { %5851 = vmatmul.mubr.msk.f32.gmra.mxu0 %vm371_vm0, %v6614_v45 }
 0x2b5   : > { %5853 = vmatprep.mubr.msk.f32.mxu0 %vm371_vm0, %v6617_v57 }
 0x2b8   : > { %5854 = vmatmul.mubr.msk.f32.gmra.mxu0 %vm371_vm0, %v6630_v11 }
 0x2b9   : > { %5856 = vmatprep.mubr.msk.f32.mxu0 %vm371_vm0, %v6638_v55 }
 0x2bc   : > { %5857 = vmatmul.mubr.msk.f32.gmra.mxu0 %vm371_vm0, %v6651_v38 }
 0x2bd   : > { %5859 = vmatprep.mubr.msk.f32.mxu0 %vm371_vm0, %v6654_v26 }
 0x2c0   : > { %5860 = vmatmul.mubr.msk.f32.gmra.mxu0 %vm371_vm0, %v6667_v15 }
 0x2c1   : > { %5862 = vmatprep.mubr.msk.f32.mxu0 %vm371_vm0, %v6675_v35 }
 0x2c4   : > { %5863 = vmatmul.mubr.msk.f32.gmra.mxu0 %vm371_vm0, %v6688_v60 }
 0x2c5   : > { %5865 = vmatprep.mubr.msk.f32.mxu0 %vm371_vm0, %v6691_v46 }
 0x2c8   : > { %5866 = vmatmul.mubr.msk.f32.gmra.mxu0 %vm371_vm0, %v3693_v19 }
 0x2c9   : > { %5868 = vmatprep.mubr.msk.f32.mxu0 %vm371_vm0, %v3694_v6 }
 0x2cc   : > { %5869 = vmatmul.mubr.msk.f32.gmra.mxu0 %vm371_vm0, %v3695_v21 }
 0x2cd   : > { %5871 = vmatprep.mubr.msk.f32.mxu0 %vm371_vm0, %v3696_v37 }
 0x2d0   : > { %5872 = vmatmul.mubr.msk.f32.gmra.mxu0 %vm371_vm0, %v3697_v56 }
 0x2d1   : > { %5874 = vmatprep.mubr.msk.f32.mxu0 %vm371_vm0, %v3698_v16 }
 0x2d4   : > { %5875 = vmatmul.mubr.msk.f32.gmra.mxu0 %vm371_vm0, %v3699_v28 }
 0x2d5   : > { %5877 = vmatprep.mubr.msk.f32.mxu0 %vm371_vm0, %v3700_v62 }
 0x2d8   : > { %5878 = vmatmul.mubr.msk.f32.gmra.mxu0 %vm371_vm0, %v3701_v34 }
 0x2d9   : > { %5880 = vmatprep.mubr.f32.mxu0 %v5969_v48 }
 0x2dc   : > { %5881 = vmatmul.mubr.f32.gmra.mxu0 %v5969_v48 }
 0x320   : > { %v5737_v47 = vpop.f32.mrf.mxu0  ;;  %v5790_v53 = vpop.f32.mrf.mxu1 }
 0x321   : > { %v4249_v49 = vadd.f32 %v5787_v44, %v5737_v47 }
 0x322   : > { %v4012_v61 = vpop.f32.mrf.mxu0  ;;  %v4253_v23 = vpop.f32.mrf.mxu1 }
 0x323   : > { %v4244_v37 = vadd.f32 %v4243_v63, %v4012_v61  ;;  %v5912_v63 = vld [vmem:[%s6042_s14 + $0x18] sm:$0xff] }
 0x324   : > { %v5740_v36 = vpop.f32.mrf.mxu0  ;;  %v5793_v40 = vpop.f32.mrf.mxu1 }
 0x325   : > { %v4259_v5 = vadd.f32 %v5790_v53, %v5740_v36 }
 0x326   : > { %v4022_v4 = vpop.f32.mrf.mxu0  ;;  %v4263_v57 = vpop.f32.mrf.mxu1 }
 0x327   : > { %v4254_v28 = vadd.f32 %v4253_v23, %v4022_v4 }
 0x328   : > { %v6790_v3 = vpop.f32.mrf.mxu0  ;;  %v6806_v38 = vpop.f32.mrf.mxu1 }
 0x329   : > { %v4269_v4 = vadd.f32 %v5793_v40, %v6790_v3 }
 0x32a   : > { %v6792_v51 = vpop.f32.mrf.mxu0  ;;  %v6812_v2 = vpop.f32.mrf.mxu1 }
 0x32b   : > { %v4264_v23 = vadd.f32 %v4263_v57, %v6792_v51 }
 0x32c   : > { %v6794_v0 = vpop.f32.mrf.mxu0  ;;  %v6818_v10 = vpop.f32.mrf.mxu1 }
 0x32d   : > { %v4279_v3 = vadd.f32 %v6806_v38, %v6794_v0  ;;  %v5915_v38 = vld [vmem:[%s6042_s14 + $0x20] sm:$0xff] }
 0x32e   : > { %v6796_v7 = vpop.f32.mrf.mxu0  ;;  %v6824_v32 = vpop.f32.mrf.mxu1 }
 0x330   : > { %v6798_v45 = vpop.f32.mrf.mxu0  ;;  %v6830_v41 = vpop.f32.mrf.mxu1 }
 0x332   : > { %v6800_v48 = vpop.f32.mrf.mxu0  ;;  %v6836_v60 = vpop.f32.mrf.mxu1 }
 0x334   : > { %v6802_v11 = vpop.f32.mrf.mxu0  ;;  %v6842_v9 = vpop.f32.mrf.mxu1 }
 0x336   : > { %v6804_v55 = vpop.f32.mrf.mxu0  ;;  %v6848_v54 = vpop.f32.mrf.mxu1 }
 0x338   : > { %v6808_v26 = vpop.f32.mrf.mxu0  ;;  %v6854_v59 = vpop.f32.mrf.mxu1 }
 0x33a   : > { %v6810_v29 = vpop.f32.mrf.mxu0  ;;  %v6860_v42 = vpop.f32.mrf.mxu1 }
 0x33c   : > { %v6814_v15 = vpop.f32.mrf.mxu0  ;;  %v6866_v14 = vpop.f32.mrf.mxu1 }
 0x33e   : > { %v6816_v31 = vpop.f32.mrf.mxu0  ;;  %v6878_v24 = vpop.f32.mrf.mxu1 }
 0x340   : > { %v6820_v18 = vpop.f32.mrf.mxu0  ;;  %v6884_v61 = vpop.f32.mrf.mxu1 }
 0x342   : > { %v6822_v27 = vpop.f32.mrf.mxu0  ;;  %v6901_v57 = vpop.f32.mrf.mxu1 }
 0x344   : > { %v6826_v35 = vpop.f32.mrf.mxu0 }
 0x346   : > { %v6828_v39 = vpop.f32.mrf.mxu0 }
 0x348   : > { %v6832_v17 = vpop.f32.mrf.mxu0 }
 0x34a   : > { %v6834_v20 = vpop.f32.mrf.mxu0 }
 0x34c   : > { %v6838_v1 = vpop.f32.mrf.mxu0 }
 0x34e   : > { %v6840_v46 = vpop.f32.mrf.mxu0 }
 0x350   : > { %v6844_v12 = vpop.f32.mrf.mxu0 }
 0x352   : > { %v6846_v52 = vpop.f32.mrf.mxu0 }
 0x354   : > { %v6850_v19 = vpop.f32.mrf.mxu0 }
 0x356   : > { %v6852_v58 = vpop.f32.mrf.mxu0 }
 0x358   : > { %v6856_v22 = vpop.f32.mrf.mxu0 }
 0x35a   : > { %v6858_v33 = vpop.f32.mrf.mxu0 }
 0x35c   : > { %v6862_v6 = vpop.f32.mrf.mxu0 }
 0x35e   : > { %v6864_v43 = vpop.f32.mrf.mxu0 }
 0x360   : > { %v5837_v21 = vpop.f32.mrf.mxu0 }
 0x361   : > { %v4635_v25 = vadd.f32 %v5837_v21, %v4249_v49 }
 0x362   : > { %v4475_v56 = vpop.f32.mrf.mxu0 }
 0x363   : > { %v4674_v13 = vmul.f32 %v6871_v30, %v4635_v25  ;;  %v4634_v16 = vadd.f32 %v4475_v56, %v4244_v37  ;;  %v5913_v56 = vld [vmem:[%s6042_s14 + $0x10] sm:$0xff] }
 0x364   : > { %v5840_v8 = vpop.f32.mrf.mxu0 }
 0x365   : > { %v4713_v62 = vadd.f32 %v6876_v50, %v4674_v13  ;;  %v4673_v34 = vmul.f32 %v6871_v30, %v4634_v16  ;;  %v4637_v44 = vadd.f32 %v5840_v8, %v4259_v5 }
 0x366   : > { %v4485_v47 = vpop.f32.mrf.mxu0 }
 0x367   : > { %v4745_v49 = vadd.f32 %v5912_v63, %v4713_v62  ;;  %v4712_v36 = vadd.f32 %v6876_v50, %v4673_v34  ;;  %v4676_v53 = vmul.f32 %v6871_v30, %v4637_v44  ;;  %v4636_v21 = vadd.f32 %v4485_v47, %v4254_v28  ;;  %v5914_v28 = vld [vmem:[%s6042_s14 + $0x28] sm:$0xff] }
 0x368   : > { %v5843_v37 = vpop.f32.mrf.mxu0  ;;  %v4274_v47 = vadd.f32 %v6812_v2, %v6796_v7  ;;  %v6917_v2 = vpop.f32.mrf.mxu1 }
 0x369   : > { %v4777_v25 = vmax.f32 %v4745_v49, 0.0  ;;  %v4744_v5 = vadd.f32 %v5913_v56, %v4712_v36  ;;  %v4715_v13 = vadd.f32 %v6876_v50, %v4676_v53  ;;  %v4675_v16 = vmul.f32 %v6871_v30, %v4636_v21 }
 0x36a   : > { %v4639_v51 = vadd.f32 %v5843_v37, %v4269_v4  ;;  %v4495_v40 = vpop.f32.mrf.mxu0  ;;  %v4289_v4 = vadd.f32 %v6818_v10, %v6798_v45  ;;  %v5917_v45 = vld [vmem:[%s6042_s14 + $0x30] sm:$0xff] }
 0x36b   : > { %4809 = vst.msk [vmem:[%s6894_s25 + $0x8] sm:$0xff] %vm371_vm0, %v4777_v25  ;;  %v4776_v8 = vmax.f32 %v4744_v5, 0.0  ;;  %v4747_v62 = vadd.f32 %v5914_v28, %v4715_v13  ;;  %v4714_v34 = vadd.f32 %v6876_v50, %v4675_v16  ;;  %v4638_v44 = vadd.f32 %v4495_v40, %v4264_v23  ;;  %v5916_v13 = vld [vmem:[%s6042_s14 + $0x38] sm:$0xff] }
 0x36c   : > { %v4678_v63 = vmul.f32 %v6871_v30, %v4639_v51  ;;  %v5846_v49 = vpop.f32.mrf.mxu0  ;;  %v4284_v28 = vadd.f32 %v6824_v32, %v6800_v48 }
 0x36d   : > { %4808 = vst.msk [vmem:[%s6894_s25] sm:$0xff] %vm371_vm0, %v4776_v8  ;;  %v4779_v0 = vmax.f32 %v4747_v62, 0.0  ;;  %v4746_v36 = vadd.f32 %v5915_v38, %v4714_v34  ;;  %v4677_v53 = vmul.f32 %v6871_v30, %v4638_v44  ;;  %v4641_v21 = vadd.f32 %v5846_v49, %v4279_v3  ;;  %v5918_v49 = vld [vmem:[%s6042_s14 + $0x48] sm:$0xff] }
 0x36e   : > { %v4717_v23 = vadd.f32 %v6876_v50, %v4678_v63  ;;  %v4505_v7 = vpop.f32.mrf.mxu0  ;;  %v4299_v62 = vadd.f32 %v6830_v41, %v6802_v11  ;;  %v5919_v41 = vld [vmem:[%s6042_s14 + $0x40] sm:$0xff] }
 0x36f   : > { %4811 = vst.msk [vmem:[%s6894_s25 + $0x18] sm:$0xff] %vm371_vm0, %v4779_v0  ;;  %v4778_v37 = vmax.f32 %v4746_v36, 0.0  ;;  %v4716_v25 = vadd.f32 %v6876_v50, %v4677_v53  ;;  %v4680_v56 = vmul.f32 %v6871_v30, %v4641_v21  ;;  %v4640_v5 = vadd.f32 %v4505_v7, %v4274_v47  ;;  %v6933_v47 = vpop.f32.mrf.mxu1 }
 0x370   : > { %v4749_v16 = vadd.f32 %v5916_v13, %v4717_v23  ;;  %v5849_v3 = vpop.f32.mrf.mxu0  ;;  %v4294_v53 = vadd.f32 %v6836_v60, %v6804_v55  ;;  %v4309_v7 = vadd.f32 %v6842_v9, %v6808_v26 }
 0x371   : > { %4810 = vst.msk [vmem:[%s6894_s25 + $0x10] sm:$0xff] %vm371_vm0, %v4778_v37  ;;  %v4748_v10 = vadd.f32 %v5917_v45, %v4716_v25  ;;  %v4719_v51 = vadd.f32 %v6876_v50, %v4680_v56  ;;  %v4679_v40 = vmul.f32 %v6871_v30, %v4640_v5  ;;  %v4643_v8 = vadd.f32 %v5849_v3, %v4289_v4  ;;  %v6949_v60 = vpop.f32.mrf.mxu1  ;;  %v5920_v56 = vld [vmem:[%s6042_s14 + $0x58] sm:$0xff] }
 0x372   : > { %v4781_v34 = vmax.f32 %v4749_v16, 0.0  ;;  %v4515_v44 = vpop.f32.mrf.mxu0  ;;  %v4304_v3 = vadd.f32 %v6848_v54, %v6810_v29  ;;  %v5922_v29 = vld [vmem:[%s6042_s14 + $0x68] sm:$0xff] }
 0x373   : > { %v4780_v63 = vmax.f32 %v4748_v10, 0.0  ;;  %v4751_v0 = vadd.f32 %v5918_v49, %v4719_v51  ;;  %v4718_v38 = vadd.f32 %v6876_v50, %v4679_v40  ;;  %v4682_v36 = vmul.f32 %v6871_v30, %v4643_v8  ;;  %v5921_v8 = vld [vmem:[%s6042_s14 + $0x50] sm:$0xff] }
 0x374   : > { %4813 = vst.msk [vmem:[%s6894_s25 + $0x28] sm:$0xff] %vm371_vm0, %v4781_v34  ;;  %v4642_v48 = vadd.f32 %v4515_v44, %v4284_v28  ;;  %v5852_v11 = vpop.f32.mrf.mxu0  ;;  %v6963_v34 = vpop.f32.mrf.mxu1 }
 0x375   : > { %4812 = vst.msk [vmem:[%s6894_s25 + $0x20] sm:$0xff] %vm371_vm0, %v4780_v63  ;;  %v4783_v32 = vmax.f32 %v4751_v0, 0.0  ;;  %v4750_v21 = vadd.f32 %v5919_v41, %v4718_v38  ;;  %v4721_v4 = vadd.f32 %v6876_v50, %v4682_v36  ;;  %v4645_v23 = vadd.f32 %v5852_v11, %v4299_v62  ;;  %v5923_v11 = vld [vmem:[%s6042_s14 + $0x60] sm:$0xff] }
 0x376   : > { %v4681_v37 = vmul.f32 %v6871_v30, %v4642_v48  ;;  %v4525_v55 = vpop.f32.mrf.mxu0  ;;  %v4319_v0 = vadd.f32 %v6854_v59, %v6814_v15  ;;  %v4314_v38 = vadd.f32 %v6860_v42, %v6816_v31  ;;  %v5924_v42 = vld [vmem:[%s6042_s14 + $0x78] sm:$0xff] }
 0x377   : > { %4815 = vst.msk [vmem:[%s6894_s25 + $0x38] sm:$0xff] %vm371_vm0, %v4783_v32  ;;  %v4782_v25 = vmax.f32 %v4750_v21, 0.0  ;;  %v4753_v5 = vadd.f32 %v5920_v56, %v4721_v4  ;;  %v4684_v13 = vmul.f32 %v6871_v30, %v4645_v23  ;;  %v4644_v16 = vadd.f32 %v4525_v55, %v4294_v53  ;;  %v6981_v23 = vpop.f32.mrf.mxu1 }
 0x378   : > { %v4720_v26 = vadd.f32 %v6876_v50, %v4681_v37  ;;  %v5855_v9 = vpop.f32.mrf.mxu0  ;;  %v4329_v4 = vadd.f32 %v6866_v14, %v6820_v18 }
 0x379   : > { %4814 = vst.msk [vmem:[%s6894_s25 + $0x30] sm:$0xff] %vm371_vm0, %v4782_v25  ;;  %v4785_v45 = vmax.f32 %v4753_v5, 0.0  ;;  %v4723_v10 = vadd.f32 %v6876_v50, %v4684_v13  ;;  %v4683_v51 = vmul.f32 %v6871_v30, %v4644_v16  ;;  %v4647_v40 = vadd.f32 %v5855_v9, %v4309_v7  ;;  %v5925_v5 = vld [vmem:[%s6042_s14 + $0x70] sm:$0xff] }
 0x37a   : > { %v4752_v28 = vadd.f32 %v5921_v8, %v4720_v26  ;;  %v4535_v62 = vpop.f32.mrf.mxu0  ;;  %v4324_v25 = vadd.f32 %v6878_v24, %v6822_v27  ;;  %v4339_v26 = vadd.f32 %v6884_v61, %v6826_v35  ;;  %v6997_v24 = vpop.f32.mrf.mxu1  ;;  %v5926_v8 = vld [vmem:[%s6042_s14 + $0x88] sm:$0xff]  ;;  %v5927_v35 = vld [vmem:[%s6042_s14 + $0x80] sm:$0xff] }
 0x37b   : > { %4817 = vst.msk [vmem:[%s6894_s25 + $0x48] sm:$0xff] %vm371_vm0, %v4785_v45  ;;  %v4755_v54 = vadd.f32 %v5922_v29, %v4723_v10  ;;  %v4722_v44 = vadd.f32 %v6876_v50, %v4683_v51  ;;  %v4686_v63 = vmul.f32 %v6871_v30, %v4647_v40  ;;  %v4646_v49 = vadd.f32 %v4535_v62, %v4304_v3 }
 0x37c   : > { %v4784_v36 = vmax.f32 %v4752_v28, 0.0  ;;  %v5858_v53 = vpop.f32.mrf.mxu0 }
 0x37d   : > { %v4787_v48 = vmax.f32 %v4755_v54, 0.0  ;;  %v4754_v32 = vadd.f32 %v5923_v11, %v4722_v44  ;;  %v4725_v41 = vadd.f32 %v6876_v50, %v4686_v63  ;;  %v4685_v21 = vmul.f32 %v6871_v30, %v4646_v49 }
 0x37e   : > { %4816 = vst.msk [vmem:[%s6894_s25 + $0x40] sm:$0xff] %vm371_vm0, %v4784_v36  ;;  %v4649_v15 = vadd.f32 %v5858_v53, %v4319_v0  ;;  %v4545_v59 = vpop.f32.mrf.mxu0  ;;  %v4334_v63 = vadd.f32 %v6901_v57, %v6828_v39  ;;  %v4349_v49 = vadd.f32 %v6917_v2, %v6832_v17  ;;  %v5826_v36 = vpop.f32.mrf.mxu1  ;;  %v5929_v2 = vld [vmem:[%s6042_s14 + $0x90] sm:$0xff] }
 0x37f   : > { %4819 = vst.msk [vmem:[%s6894_s25 + $0x58] sm:$0xff] %vm371_vm0, %v4787_v48  ;;  %v4786_v31 = vmax.f32 %v4754_v32, 0.0  ;;  %v4757_v7 = vadd.f32 %v5924_v42, %v4725_v41  ;;  %v4724_v37 = vadd.f32 %v6876_v50, %v4685_v21  ;;  %v4648_v55 = vadd.f32 %v4545_v59, %v4314_v38  ;;  %v5928_v48 = vld [vmem:[%s6042_s14 + $0x98] sm:$0xff] }
 0x380   : > { %v4688_v18 = vmul.f32 %v6871_v30, %v4649_v15  ;;  %v5861_v14 = vpop.f32.mrf.mxu0  ;;  %v4344_v21 = vadd.f32 %v6933_v47, %v6834_v20  ;;  %v4373_v47 = vpop.f32.mrf.mxu1 }
 0x381   : > { %4818 = vst.msk [vmem:[%s6894_s25 + $0x50] sm:$0xff] %vm371_vm0, %v4786_v31  ;;  %v4789_v56 = vmax.f32 %v4757_v7, 0.0  ;;  %v4756_v13 = vadd.f32 %v5925_v5, %v4724_v37  ;;  %v4687_v16 = vmul.f32 %v6871_v30, %v4648_v55  ;;  %v4651_v3 = vadd.f32 %v5861_v14, %v4329_v4  ;;  %v5930_v37 = vld [vmem:[%s6042_s14 + $0xa8] sm:$0xff] }
 0x382   : > { %v4727_v9 = vadd.f32 %v6876_v50, %v4688_v18  ;;  %v4555_v27 = vpop.f32.mrf.mxu0  ;;  %v4359_v31 = vadd.f32 %v6949_v60, %v6838_v1  ;;  %v4354_v14 = vadd.f32 %v6963_v34, %v6840_v46  ;;  %v5932_v46 = vld [vmem:[%s6042_s14 + $0xb8] sm:$0xff] }
 0x383   : > { %4821 = vst.msk [vmem:[%s6894_s25 + $0x68] sm:$0xff] %vm371_vm0, %v4789_v56  ;;  %v4788_v45 = vmax.f32 %v4756_v13, 0.0  ;;  %v4726_v10 = vadd.f32 %v6876_v50, %v4687_v16  ;;  %v4690_v51 = vmul.f32 %v6871_v30, %v4651_v3  ;;  %v4650_v40 = vadd.f32 %v4555_v27, %v4324_v25  ;;  %v5931_v3 = vld [vmem:[%s6042_s14 + $0xa0] sm:$0xff]  ;;  %v5829_v27 = vpop.f32.mrf.mxu1 }
 0x384   : > { %v4759_v28 = vadd.f32 %v5926_v8, %v4727_v9  ;;  %v5864_v62 = vpop.f32.mrf.mxu0  ;;  %v4364_v8 = vadd.f32 %v6997_v24, %v6846_v52  ;;  %v5934_v24 = vld [vmem:[%s6042_s14 + $0xc8] sm:$0xff] }
 0x385   : > { %4820 = vst.msk [vmem:[%s6894_s25 + $0x60] sm:$0xff] %vm371_vm0, %v4788_v45  ;;  %v4758_v61 = vadd.f32 %v5927_v35, %v4726_v10  ;;  %v4729_v29 = vadd.f32 %v6876_v50, %v4690_v51  ;;  %v4689_v54 = vmul.f32 %v6871_v30, %v4650_v40  ;;  %v4653_v44 = vadd.f32 %v5864_v62, %v4339_v26 }
 0x386   : > { %v4791_v0 = vmax.f32 %v4759_v28, 0.0  ;;  %v4565_v38 = vpop.f32.mrf.mxu0  ;;  %v4369_v40 = vadd.f32 %v6981_v23, %v6844_v12 }
 0x387   : > { %v4790_v53 = vmax.f32 %v4758_v61, 0.0  ;;  %v4761_v11 = vadd.f32 %v5928_v48, %v4729_v29  ;;  %v4728_v32 = vadd.f32 %v6876_v50, %v4689_v54  ;;  %v4692_v41 = vmul.f32 %v6871_v30, %v4653_v44  ;;  %v5933_v61 = vld [vmem:[%s6042_s14 + $0xb0] sm:$0xff] }
 0x388   : > { %4823 = vst.msk [vmem:[%s6894_s25 + $0x78] sm:$0xff] %vm371_vm0, %v4791_v0  ;;  %v4652_v39 = vadd.f32 %v4565_v38, %v4334_v63  ;;  %v5867_v57 = vpop.f32.mrf.mxu0  ;;  %v4379_v63 = vadd.f32 %v5826_v36, %v6850_v19  ;;  %v4374_v48 = vadd.f32 %v4373_v47, %v6852_v58 }
 0x389   : > { %4822 = vst.msk [vmem:[%s6894_s25 + $0x70] sm:$0xff] %vm371_vm0, %v4790_v53  ;;  %v4793_v17 = vmax.f32 %v4761_v11, 0.0  ;;  %v4760_v4 = vadd.f32 %v5929_v2, %v4728_v32  ;;  %v4731_v15 = vadd.f32 %v6876_v50, %v4692_v41  ;;  %v4655_v59 = vadd.f32 %v5867_v57, %v4349_v49  ;;  %v4383_v49 = vpop.f32.mrf.mxu1  ;;  %v5935_v32 = vld [vmem:[%s6042_s14 + $0xc0] sm:$0xff] }
 0x38a   : > { %v4691_v42 = vmul.f32 %v6871_v30, %v4652_v39  ;;  %v4575_v20 = vpop.f32.mrf.mxu0  ;;  %v4389_v57 = vadd.f32 %v5829_v27, %v6856_v22 }
 0x38b   : > { %4825 = vst.msk [vmem:[%s6894_s25 + $0x88] sm:$0xff] %vm371_vm0, %v4793_v17  ;;  %v4792_v7 = vmax.f32 %v4760_v4, 0.0  ;;  %v4763_v55 = vadd.f32 %v5930_v37, %v4731_v15  ;;  %v4694_v25 = vmul.f32 %v6871_v30, %v4655_v59  ;;  %v4654_v18 = vadd.f32 %v4575_v20, %v4344_v21  ;;  %v5832_v58 = vpop.f32.mrf.mxu1 }
 0x38c   : > { %v4730_v1 = vadd.f32 %v6876_v50, %v4691_v42  ;;  %v5870_v60 = vpop.f32.mrf.mxu0  ;;  %v5936_v42 = vld [vmem:[%s6042_s14 + $0xd8] sm:$0xff] }
 0x38d   : > { %4824 = vst.msk [vmem:[%s6894_s25 + $0x80] sm:$0xff] %vm371_vm0, %v4792_v7  ;;  %v4795_v56 = vmax.f32 %v4763_v55, 0.0  ;;  %v4733_v5 = vadd.f32 %v6876_v50, %v4694_v25  ;;  %v4693_v13 = vmul.f32 %v6871_v30, %v4654_v18  ;;  %v4657_v16 = vadd.f32 %v5870_v60, %v4359_v31  ;;  %v5937_v7 = vld [vmem:[%s6042_s14 + $0xd0] sm:$0xff] }
 0x38e   : > { %v4762_v26 = vadd.f32 %v5931_v3, %v4730_v1  ;;  %v4585_v9 = vpop.f32.mrf.mxu0  ;;  %v4384_v18 = vadd.f32 %v4383_v49, %v6858_v33 }
 0x38f   : > { %4827 = vst.msk [vmem:[%s6894_s25 + $0x98] sm:$0xff] %vm371_vm0, %v4795_v56  ;;  %v4765_v34 = vadd.f32 %v5932_v46, %v4733_v5  ;;  %v4732_v45 = vadd.f32 %v6876_v50, %v4693_v13  ;;  %v4696_v10 = vmul.f32 %v6871_v30, %v4657_v16  ;;  %v4656_v51 = vadd.f32 %v4585_v9, %v4354_v14  ;;  %v4393_v56 = vpop.f32.mrf.mxu1  ;;  %v5938_v13 = vld [vmem:[%s6042_s14 + $0xe8] sm:$0xff]  ;;  %v5939_v46 = vld [vmem:[%s6042_s14 + $0xe0] sm:$0xff] }
 0x390   : > { %v4794_v28 = vmax.f32 %v4762_v26, 0.0  ;;  %v5873_v62 = vpop.f32.mrf.mxu0  ;;  %v4399_v14 = vadd.f32 %v5832_v58, %v6862_v6  ;;  %v4394_v9 = vadd.f32 %v4393_v56, %v6864_v43 }
 0x391   : > { %v4797_v35 = vmax.f32 %v4765_v34, 0.0  ;;  %v4764_v29 = vadd.f32 %v5933_v61, %v4732_v45  ;;  %v4735_v54 = vadd.f32 %v6876_v50, %v4696_v10  ;;  %v4695_v44 = vmul.f32 %v6871_v30, %v4656_v51 }
 0x392   : > { %4826 = vst.msk [vmem:[%s6894_s25 + $0x90] sm:$0xff] %vm371_vm0, %v4794_v28  ;;  %v4659_v12 = vadd.f32 %v5873_v62, %v4369_v40  ;;  %v4595_v23 = vpop.f32.mrf.mxu0 }
 0x393   : > { %4829 = vst.msk [vmem:[%s6894_s25 + $0xa8] sm:$0xff] %vm371_vm0, %v4797_v35  ;;  %v4796_v52 = vmax.f32 %v4764_v29, 0.0  ;;  %v4767_v0 = vadd.f32 %v5934_v24, %v4735_v54  ;;  %v4734_v38 = vadd.f32 %v6876_v50, %v4695_v44  ;;  %v4658_v53 = vadd.f32 %v4595_v23, %v4364_v8  ;;  %v5940_v8 = vld [vmem:[%s6042_s14 + $0xf8] sm:$0xff]  ;;  %v5942_v23 = vld [vmem:[%s6042_s14 + $0x108] sm:$0xff] }
 0x394   : > { %v4698_v11 = vmul.f32 %v6871_v30, %v4659_v12  ;;  %v5876_v19 = vpop.f32.mrf.mxu0 }
 0x395   : > { %4828 = vst.msk [vmem:[%s6894_s25 + $0xa0] sm:$0xff] %vm371_vm0, %v4796_v52  ;;  %v4799_v36 = vmax.f32 %v4767_v0, 0.0  ;;  %v4766_v41 = vadd.f32 %v5935_v32, %v4734_v38  ;;  %v4697_v21 = vmul.f32 %v6871_v30, %v4658_v53  ;;  %v4661_v39 = vadd.f32 %v5876_v19, %v4379_v63  ;;  %v5941_v63 = vld [vmem:[%s6042_s14 + $0xf0] sm:$0xff]  ;;  %v5943_v38 = vld [vmem:[%s6042_s14 + $0x100] sm:$0xff] }
 0x396   : > { %v4737_v17 = vadd.f32 %v6876_v50, %v4698_v11  ;;  %v4605_v2 = vpop.f32.mrf.mxu0 }
 0x397   : > { %4831 = vst.msk [vmem:[%s6894_s25 + $0xb8] sm:$0xff] %vm371_vm0, %v4799_v36  ;;  %v4798_v4 = vmax.f32 %v4766_v41, 0.0  ;;  %v4736_v15 = vadd.f32 %v6876_v50, %v4697_v21  ;;  %v4700_v59 = vmul.f32 %v6871_v30, %v4661_v39  ;;  %v4660_v31 = vadd.f32 %v4605_v2, %v4374_v48 }
 0x398   : > { %v4769_v20 = vadd.f32 %v5936_v42, %v4737_v17  ;;  %v5879_v47 = vpop.f32.mrf.mxu0 }
 0x399   : > { %4830 = vst.msk [vmem:[%s6894_s25 + $0xb0] sm:$0xff] %vm371_vm0, %v4798_v4  ;;  %v4768_v22 = vadd.f32 %v5937_v7, %v4736_v15  ;;  %v4739_v37 = vadd.f32 %v6876_v50, %v4700_v59  ;;  %v4699_v55 = vmul.f32 %v6871_v30, %v4660_v31  ;;  %v4663_v25 = vadd.f32 %v5879_v47, %v4389_v57 }
 0x39a   : > { %v4801_v1 = vmax.f32 %v4769_v20, 0.0  ;;  %v4615_v60 = vpop.f32.mrf.mxu0 }
 0x39b   : > { %v4800_v5 = vmax.f32 %v4768_v22, 0.0  ;;  %v4771_v16 = vadd.f32 %v5938_v13, %v4739_v37  ;;  %v4738_v3 = vadd.f32 %v6876_v50, %v4699_v55  ;;  %v4702_v26 = vmul.f32 %v6871_v30, %v4663_v25 }
 0x39c   : > { %4833 = vst.msk [vmem:[%s6894_s25 + $0xc8] sm:$0xff] %vm371_vm0, %v4801_v1  ;;  %v4662_v33 = vadd.f32 %v4615_v60, %v4384_v18  ;;  %v5882_v27 = vpop.f32.mrf.mxu0 }
 0x39d   : > { %4832 = vst.msk [vmem:[%s6894_s25 + $0xc0] sm:$0xff] %vm371_vm0, %v4800_v5  ;;  %v4803_v6 = vmax.f32 %v4771_v16, 0.0  ;;  %v4770_v34 = vadd.f32 %v5939_v46, %v4738_v3  ;;  %v4741_v45 = vadd.f32 %v6876_v50, %v4702_v26  ;;  %v4665_v10 = vadd.f32 %v5882_v27, %v4399_v14 }
 0x39e   : > { %v4701_v51 = vmul.f32 %v6871_v30, %v4662_v33  ;;  %v4625_v40 = vpop.f32.mrf.mxu0 }
 0x39f   : > { %4835 = vst.msk [vmem:[%s6894_s25 + $0xd8] sm:$0xff] %vm371_vm0, %v4803_v6  ;;  %v4802_v43 = vmax.f32 %v4770_v34, 0.0  ;;  %v4773_v28 = vadd.f32 %v5940_v8, %v4741_v45  ;;  %v4704_v62 = vmul.f32 %v6871_v30, %v4665_v10  ;;  %v4664_v35 = vadd.f32 %v4625_v40, %v4394_v9 }
 0x3a0   : > { %v4740_v61 = vadd.f32 %v6876_v50, %v4701_v51 }
 0x3a1   : > { %4834 = vst.msk [vmem:[%s6894_s25 + $0xd0] sm:$0xff] %vm371_vm0, %v4802_v43  ;;  %v4805_v29 = vmax.f32 %v4773_v28, 0.0  ;;  %v4743_v54 = vadd.f32 %v6876_v50, %v4704_v62  ;;  %v4703_v44 = vmul.f32 %v6871_v30, %v4664_v35 }
 0x3a2   : > { %v4772_v12 = vadd.f32 %v5941_v63, %v4740_v61 }
 0x3a3   : > { %4837 = vst.msk [vmem:[%s6894_s25 + $0xe8] sm:$0xff] %vm371_vm0, %v4805_v29  ;;  %v4775_v49 = vadd.f32 %v5942_v23, %v4743_v54  ;;  %v4742_v52 = vadd.f32 %v6876_v50, %v4703_v44 }
 0x3a4   : > { %v4804_v24 = vmax.f32 %v4772_v12, 0.0 }
 0x3a5   : > { %v4807_v0 = vmax.f32 %v4775_v49, 0.0  ;;  %v4774_v53 = vadd.f32 %v5943_v38, %v4742_v52 }
 0x3a6   : > { %4836 = vst.msk [vmem:[%s6894_s25 + $0xe0] sm:$0xff] %vm371_vm0, %v4804_v24 }
 0x3a7   : > { %4839 = vst.msk [vmem:[%s6894_s25 + $0xf8] sm:$0xff] %vm371_vm0, %v4807_v0  ;;  %v4806_v48 = vmax.f32 %v4774_v53, 0.0 }
 0x3a9   : > { %4838 = vst.msk [vmem:[%s6894_s25 + $0xf0] sm:$0xff] %vm371_vm0, %v4806_v48 }
 0x3aa PF: > { %s18_s29 = sadd.s32 1, %s5966_s29   ;;  %s7128_s27 = smov %s5962_s28 }
 0x3ab   : > { %p15_p5 = scmp.ge.s32.totalorder %s18_s29, 4   ;;  %s7129_s28 = smov %s7131_s30 }
 0x3ad   :  { %17 = sbr.rel (!%p15_p5) target bundleno = 2 (0x2), region = 84 }

</bundles_post_ra>
